<compile_context>
chip_gen: v7x
topology: tpu7x:2x2x1
jax: 0.10.0
libtpu: 0.0.40
codegen_flags: <defaults>
</compile_context>

<pallas_src>
import jax
import jax.numpy as jnp
from jax.experimental import pallas as pl
from jax.experimental.pallas import tpu as pltpu


# --------------------------------------------------------------------------- #
# Pallas kernels
# --------------------------------------------------------------------------- #
def _conv_bias_pool_relu_kernel(w_ref, b_ref, c_ref, o_ref):
    """Fused conv-as-matmul + bias + 2x2/stride-2 max-pool + ReLU.

    w_ref : (Cout, K)   bf16  flattened conv weight (torch w.view(Cout, -1))
    b_ref : (Cout, 1)   f32   bias
    c_ref : (4, K, T)   bf16  im2col columns; leading dim = pool parity (ph, pw)
    o_ref : (Cout, T)   bf16  pooled + ReLU'd output tile (lane-dense spatial)
    """
    w = w_ref[...]
    acc = jnp.dot(w, c_ref[0], preferred_element_type=jnp.float32)
    for q in range(1, 4):                       # max over the 4 pool quarters
        acc = jnp.maximum(acc, jnp.dot(w, c_ref[q],
                                       preferred_element_type=jnp.float32))
    acc = acc + b_ref[...]                      # bias is per-channel => commutes with max
    o_ref[...] = jnp.maximum(acc, 0.0).astype(o_ref.dtype)


def conv_relu_pool(cols, w_mat, b, *, tile_s=None):
    """cols: (4, K, S) bf16; w_mat: (Cout, K) bf16; b: (Cout, 1) f32 -> (Cout, S) bf16."""
    _, K, S = cols.shape
    Cout = w_mat.shape[0]
    if tile_s is None or tile_s >= S:
        tile_s = S
    n_blocks = pl.cdiv(S, tile_s)
    return pl.pallas_call(
        _conv_bias_pool_relu_kernel,
        out_shape=jax.ShapeDtypeStruct((Cout, S), jnp.bfloat16),
        grid=(n_blocks,),
        in_specs=[
            pl.BlockSpec((Cout, K), lambda i: (0, 0)),
            pl.BlockSpec((Cout, 1), lambda i: (0, 0)),
            pl.BlockSpec((4, K, tile_s), lambda i: (0, 0, i)),
        ],
        out_specs=pl.BlockSpec((Cout, tile_s), lambda i: (0, i)),
        compiler_params=pltpu.CompilerParams(dimension_semantics=("parallel",)),
    )(w_mat, b, cols)


def _mlp_head_kernel(x_ref, w1_ref, b1_ref, w2_ref, b2_ref, o_ref):
    """Fused fc1 + bias + ReLU + fc2 + bias + sigmoid; everything lives in VMEM."""
    h = jnp.dot(x_ref[...], w1_ref[...], preferred_element_type=jnp.float32)
    h = jnp.maximum(h + b1_ref[...], 0.0)                               # (B, 32) f32
    z = jnp.dot(h.astype(jnp.bfloat16), w2_ref[...],
                preferred_element_type=jnp.float32) + b2_ref[...]       # (B, 4) f32
    ez = jnp.exp(-jnp.abs(z))                                           # stable sigmoid
    o_ref[...] = jnp.where(z >= 0.0, 1.0 / (1.0 + ez), ez / (1.0 + ez)
                           ).astype(o_ref.dtype)


def mlp_head(x, w1, b1, w2, b2):
    B, F = x.shape
    H = w1.shape[1]
    O = w2.shape[1]
    return pl.pallas_call(
        _mlp_head_kernel,
        out_shape=jax.ShapeDtypeStruct((B, O), jnp.float32),
        grid=(1,),
        in_specs=[
            pl.BlockSpec((B, F), lambda i: (0, 0)),
            pl.BlockSpec((F, H), lambda i: (0, 0)),
            pl.BlockSpec((1, H), lambda i: (0, 0)),
            pl.BlockSpec((H, O), lambda i: (0, 0)),
            pl.BlockSpec((1, O), lambda i: (0, 0)),
        ],
        out_specs=pl.BlockSpec((B, O), lambda i: (0, 0)),
        compiler_params=pltpu.CompilerParams(dimension_semantics=("arbitrary",)),
    )(x, w1, b1, w2, b2)


# --------------------------------------------------------------------------- #
# Glue (patch gather / parameter packing) in plain JAX
# --------------------------------------------------------------------------- #
def im2col_pool_quarters(x_cbhw, k):
    """(C, B, H, W) -> ((4, C*k*k, B*Hp*Wp), Hp, Wp).

    Quarter q = ph*2 + pw holds the columns of output positions
    (h, w) = (2*hp + ph, 2*wp + pw), so a max over the leading axis of the conv
    result IS the 2x2/stride-2 max-pool.  Row order (C, kh, kw) matches
    torch's conv weight .view(Cout, -1); column order is (b, hp, wp).
    """
    C, B, H, W = x_cbhw.shape
    Ho, Wo = H - k + 1, W - k + 1
    Hp, Wp = Ho // 2, Wo // 2
    patches = [x_cbhw[:, :, kh:kh + Ho, kw:kw + Wo]
               for kh in range(k) for kw in range(k)]        # each (C, B, Ho, Wo)
    p = jnp.stack(patches, axis=1)                            # (C, k*k, B, Ho, Wo)
    p = p.reshape(C, k * k, B, Hp, 2, Wp, 2)
    p = p.transpose(4, 6, 0, 1, 2, 3, 5)                      # (ph, pw, C, k*k, B, Hp, Wp)
    return p.reshape(4, C * k * k, B * Hp * Wp), Hp, Wp


def init_params(key):
    """Random parameters in the native PyTorch layouts of OperatorClassifier."""
    ks = jax.random.split(key, 8)

    def n(k, shape, scale):
        return (scale * jax.random.normal(k, shape)).astype(jnp.float32)

    return {
        "conv1_w": n(ks[0], (32, 1, 5, 5), 0.2),
        "conv1_b": n(ks[1], (32,), 0.1),
        "conv2_w": n(ks[2], (64, 32, 5, 5), 0.05),
        "conv2_b": n(ks[3], (64,), 0.1),
        "fc1_w": n(ks[4], (32, 4 * 4 * 64), 0.03),           # PyTorch Linear: (out, in)
        "fc1_b": n(ks[5], (32,), 0.1),
        "fc2_w": n(ks[6], (4, 32), 0.1),
        "fc2_b": n(ks[7], (4,), 0.1),
    }


def prepare_params(p):
    """One-time weight reshape / transpose / cast into matmul-ready bf16 layouts."""
    return {
        "w1": p["conv1_w"].reshape(32, -1).astype(jnp.bfloat16),      # (32, 25)
        "b1": p["conv1_b"].reshape(32, 1).astype(jnp.float32),
        "w2": p["conv2_w"].reshape(64, -1).astype(jnp.bfloat16),      # (64, 800)
        "b2": p["conv2_b"].reshape(64, 1).astype(jnp.float32),
        "fc1_w": p["fc1_w"].T.astype(jnp.bfloat16),                   # (1024, 32)
        "fc1_b": p["fc1_b"].reshape(1, -1).astype(jnp.float32),
        "fc2_w": p["fc2_w"].T.astype(jnp.bfloat16),                   # (32, 4)
        "fc2_b": p["fc2_b"].reshape(1, -1).astype(jnp.float32),
    }


@jax.jit
def operator_classifier_forward(params, x):
    """x: (B, 1, 28, 28) f32 NCHW -> (B, 4) f32 sigmoid probabilities."""
    B = x.shape[0]
    c1 = params["w1"].shape[0]
    c2 = params["w2"].shape[0]
    # TODO(synk): the k x k patch gather below is still XLA glue; a fully in-kernel
    # im2col (DMA'ing shifted windows) would remove one more HBM round trip.
    x_c = jnp.transpose(x, (1, 0, 2, 3)).astype(jnp.bfloat16)         # (Cin=1, B, 28, 28)
    cols1, hp1, wp1 = im2col_pool_quarters(x_c, 5)                    # (4, 25, B*144)
    y1 = conv_relu_pool(cols1, params["w1"], params["b1"], tile_s=128)  # (32, B*144) bf16
    y1 = y1.reshape(c1, B, hp1, wp1)                                  # free reshape (C,B,H,W)
    cols2, hp2, wp2 = im2col_pool_quarters(y1, 5)                     # (4, 800, B*16)
    y2 = conv_relu_pool(cols2, params["w2"], params["b2"])            # (64, B*16) bf16
    # flatten to PyTorch's .view(-1, 4*4*64) feature order (c, h, w) per batch row
    feats = y2.reshape(c2, B, hp2 * wp2).transpose(1, 0, 2).reshape(B, c2 * hp2 * wp2)
    return mlp_head(feats, params["fc1_w"], params["fc1_b"],
                    params["fc2_w"], params["fc2_b"])


# --------------------------------------------------------------------------- #
# Pure-JAX reference with the same bf16-in / f32-accumulate precision choices
# --------------------------------------------------------------------------- #
def reference_forward(p, x):
    bf = jnp.bfloat16

    def conv_relu(z, w, b):
        y = jax.lax.conv_general_dilated(
            z.astype(bf), w.astype(bf), window_strides=(1, 1), padding="VALID",
            dimension_numbers=("NCHW", "OIHW", "NCHW"),
            preferred_element_type=jnp.float32)
        return jnp.maximum(y + b.reshape(1, -1, 1, 1), 0.0)

    def pool(z):
        return jax.lax.reduce_window(z, -jnp.inf, jax.lax.max,
                                     (1, 1, 2, 2), (1, 1, 2, 2), "VALID")

    y = pool(conv_relu(x, p["conv1_w"], p["conv1_b"])).astype(bf)
    y = pool(conv_relu(y, p["conv2_w"], p["conv2_b"])).astype(bf)
    feats = y.reshape(y.shape[0], -1)
    h = jnp.maximum(
        jnp.dot(feats, p["fc1_w"].T.astype(bf),
                preferred_element_type=jnp.float32) + p["fc1_b"], 0.0)
    z = jnp.dot(h.astype(bf), p["fc2_w"].T.astype(bf),
                preferred_element_type=jnp.float32) + p["fc2_b"]
    return jax.nn.sigmoid(z)


if __name__ == "__main__":
    key = jax.random.PRNGKey(0)
    k_x, k_p = jax.random.split(key)
    # 28x28 single-channel input is what the 4*4*64 flatten in forward() implies.
    x = jax.random.normal(k_x, (2, 1, 28, 28), dtype=jnp.float32)
    raw = init_params(k_p)
    params = prepare_params(raw)

    out = jax.block_until_ready(operator_classifier_forward(params, x))

    assert out.shape == (2, 4), out.shape
    assert bool(jnp.all((out >= 0.0) & (out <= 1.0)))          # sigmoid range sanity
    ref = reference_forward(raw, x)
    err = float(jnp.max(jnp.abs(out - ref.astype(jnp.float32))))
    assert err < 2e-2, f"mismatch vs reference: {err}"
    print("KERNEL_OK")
</pallas_src>

<mosaic_0001>
module attributes {stable_mosaic.version = 11 : i64} {
  func.func @_conv_bias_pool_relu_kernel(%arg0: i32, %arg1: memref<32x25xbf16, #tpu.memory_space<vmem>>, %arg2: memref<32x1xf32, #tpu.memory_space<vmem>>, %arg3: memref<4x25x128xbf16, #tpu.memory_space<vmem>>, %arg4: memref<32x128xbf16, #tpu.memory_space<vmem>>) attributes {dimension_semantics = [#tpu.dimension_semantics<parallel>], iteration_bounds = array<i64: 3>, scalar_prefetch = 0 : i64, scratch_operands = 0 : i64, tpu.core_type = #tpu.core_type<tc>, window_params = [{pipeline_mode = #tpu.pipeline_mode<synchronous>, transform_indices = @transform_0, window_bounds = array<i64: 32, 25>}, {pipeline_mode = #tpu.pipeline_mode<synchronous>, transform_indices = @transform_1, window_bounds = array<i64: 32, 1>}, {transform_indices = @transform_2, window_bounds = array<i64: 4, 25, 128>}, {transform_indices = @transform_3, window_bounds = array<i64: 32, 128>}]} {
    %c0 = arith.constant 0 : index
    %c0_0 = arith.constant 0 : index
    %0 = vector.load %arg1[%c0, %c0_0] : memref<32x25xbf16, #tpu.memory_space<vmem>>, vector<32x25xbf16>
    %c0_1 = arith.constant 0 : index
    %c0_2 = arith.constant 0 : index
    %c0_3 = arith.constant 0 : index
    %1 = vector.load %arg3[%c0_1, %c0_2, %c0_3] : memref<4x25x128xbf16, #tpu.memory_space<vmem>>, vector<1x25x128xbf16>
    %2 = vector.shape_cast %1 : vector<1x25x128xbf16> to vector<25x128xbf16>
    %cst = arith.constant dense<0.000000e+00> : vector<32x128xf32>
    %3 = tpu.matmul %0, %2, %cst {dimension_numbers = #tpu.dot_dimension_numbers<[1], [0], [0], [1], [0, 0, 1, 1], [], []>} : vector<32x25xbf16>, vector<25x128xbf16>, vector<32x128xf32> -> vector<32x128xf32>
    %c1 = arith.constant 1 : index
    %c0_4 = arith.constant 0 : index
    %c0_5 = arith.constant 0 : index
    %4 = vector.load %arg3[%c1, %c0_4, %c0_5] : memref<4x25x128xbf16, #tpu.memory_space<vmem>>, vector<1x25x128xbf16>
    %5 = vector.shape_cast %4 : vector<1x25x128xbf16> to vector<25x128xbf16>
    %cst_6 = arith.constant dense<0.000000e+00> : vector<32x128xf32>
    %6 = tpu.matmul %0, %5, %cst_6 {dimension_numbers = #tpu.dot_dimension_numbers<[1], [0], [0], [1], [0, 0, 1, 1], [], []>} : vector<32x25xbf16>, vector<25x128xbf16>, vector<32x128xf32> -> vector<32x128xf32>
    %7 = arith.maximumf %3, %6 : vector<32x128xf32>
    %c2 = arith.constant 2 : index
    %c0_7 = arith.constant 0 : index
    %c0_8 = arith.constant 0 : index
    %8 = vector.load %arg3[%c2, %c0_7, %c0_8] : memref<4x25x128xbf16, #tpu.memory_space<vmem>>, vector<1x25x128xbf16>
    %9 = vector.shape_cast %8 : vector<1x25x128xbf16> to vector<25x128xbf16>
    %cst_9 = arith.constant dense<0.000000e+00> : vector<32x128xf32>
    %10 = tpu.matmul %0, %9, %cst_9 {dimension_numbers = #tpu.dot_dimension_numbers<[1], [0], [0], [1], [0, 0, 1, 1], [], []>} : vector<32x25xbf16>, vector<25x128xbf16>, vector<32x128xf32> -> vector<32x128xf32>
    %11 = arith.maximumf %7, %10 : vector<32x128xf32>
    %c3 = arith.constant 3 : index
    %c0_10 = arith.constant 0 : index
    %c0_11 = arith.constant 0 : index
    %12 = vector.load %arg3[%c3, %c0_10, %c0_11] : memref<4x25x128xbf16, #tpu.memory_space<vmem>>, vector<1x25x128xbf16>
    %13 = vector.shape_cast %12 : vector<1x25x128xbf16> to vector<25x128xbf16>
    %cst_12 = arith.constant dense<0.000000e+00> : vector<32x128xf32>
    %14 = tpu.matmul %0, %13, %cst_12 {dimension_numbers = #tpu.dot_dimension_numbers<[1], [0], [0], [1], [0, 0, 1, 1], [], []>} : vector<32x25xbf16>, vector<25x128xbf16>, vector<32x128xf32> -> vector<32x128xf32>
    %15 = arith.maximumf %11, %14 : vector<32x128xf32>
    %c0_13 = arith.constant 0 : index
    %c0_14 = arith.constant 0 : index
    %16 = vector.load %arg2[%c0_13, %c0_14] : memref<32x1xf32, #tpu.memory_space<vmem>>, vector<32x1xf32>
    %17 = vector.broadcast %16 : vector<32x1xf32> to vector<32x128xf32>
    %18 = arith.addf %15, %17 : vector<32x128xf32>
    %cst_15 = arith.constant 0.000000e+00 : f32
    %19 = vector.broadcast %cst_15 : f32 to vector<32x128xf32>
    %20 = arith.maximumf %18, %19 : vector<32x128xf32>
    %21 = arith.truncf %20 : vector<32x128xf32> to vector<32x128xbf16>
    %c0_16 = arith.constant 0 : index
    %c0_17 = arith.constant 0 : index
    %22 = vector.load %arg4[%c0_16, %c0_17] : memref<32x128xbf16, #tpu.memory_space<vmem>>, vector<32x128xbf16>
    tpu.vector_store %arg4[%c0_16, %c0_17], %21 {strides = array<i32>} : memref<32x128xbf16, #tpu.memory_space<vmem>>, vector<32x128xbf16>,
    return
  }
  func.func @transform_0(%arg0: i32) -> (i32, i32) {
    %c0_i32 = arith.constant 0 : i32
    %c0_i32_0 = arith.constant 0 : i32
    %c0_i32_1 = arith.constant 0 : i32
    return %c0_i32, %c0_i32_0 : i32, i32
  }
  func.func @transform_1(%arg0: i32) -> (i32, i32) {
    %c0_i32 = arith.constant 0 : i32
    %c0_i32_0 = arith.constant 0 : i32
    %c0_i32_1 = arith.constant 0 : i32
    return %c0_i32, %c0_i32_0 : i32, i32
  }
  func.func @transform_2(%arg0: i32) -> (i32, i32, i32) {
    %c0_i32 = arith.constant 0 : i32
    %c0_i32_0 = arith.constant 0 : i32
    %c0_i32_1 = arith.constant 0 : i32
    return %c0_i32, %c0_i32_0, %arg0 : i32, i32, i32
  }
  func.func @transform_3(%arg0: i32) -> (i32, i32) {
    %c0_i32 = arith.constant 0 : i32
    %c0_i32_0 = arith.constant 0 : i32
    return %c0_i32, %arg0 : i32, i32
  }
}

module attributes {stable_mosaic.version = 11 : i64} {
  func.func @_conv_bias_pool_relu_kernel(%arg0: i32, %arg1: memref<64x800xbf16, #tpu.memory_space<vmem>>, %arg2: memref<64x1xf32, #tpu.memory_space<vmem>>, %arg3: memref<4x800x32xbf16, #tpu.memory_space<vmem>>, %arg4: memref<64x32xbf16, #tpu.memory_space<vmem>>) attributes {dimension_semantics = [#tpu.dimension_semantics<parallel>], iteration_bounds = array<i64: 1>, scalar_prefetch = 0 : i64, scratch_operands = 0 : i64, tpu.core_type = #tpu.core_type<tc>, window_params = [{pipeline_mode = #tpu.pipeline_mode<synchronous>, transform_indices = @transform_0, window_bounds = array<i64: 64, 800>}, {pipeline_mode = #tpu.pipeline_mode<synchronous>, transform_indices = @transform_1, window_bounds = array<i64: 64, 1>}, {transform_indices = @transform_2, window_bounds = array<i64: 4, 800, 32>}, {transform_indices = @transform_3, window_bounds = array<i64: 64, 32>}]} {
    %c0 = arith.constant 0 : index
    %c0_0 = arith.constant 0 : index
    %0 = vector.load %arg1[%c0, %c0_0] : memref<64x800xbf16, #tpu.memory_space<vmem>>, vector<64x800xbf16>
    %c0_1 = arith.constant 0 : index
    %c0_2 = arith.constant 0 : index
    %c0_3 = arith.constant 0 : index
    %1 = vector.load %arg3[%c0_1, %c0_2, %c0_3] : memref<4x800x32xbf16, #tpu.memory_space<vmem>>, vector<1x800x32xbf16>
    %2 = vector.shape_cast %1 : vector<1x800x32xbf16> to vector<800x32xbf16>
    %cst = arith.constant dense<0.000000e+00> : vector<64x32xf32>
    %3 = tpu.matmul %0, %2, %cst {dimension_numbers = #tpu.dot_dimension_numbers<[1], [0], [0], [1], [0, 0, 1, 1], [], []>} : vector<64x800xbf16>, vector<800x32xbf16>, vector<64x32xf32> -> vector<64x32xf32>
    %c1 = arith.constant 1 : index
    %c0_4 = arith.constant 0 : index
    %c0_5 = arith.constant 0 : index
    %4 = vector.load %arg3[%c1, %c0_4, %c0_5] : memref<4x800x32xbf16, #tpu.memory_space<vmem>>, vector<1x800x32xbf16>
    %5 = vector.shape_cast %4 : vector<1x800x32xbf16> to vector<800x32xbf16>
    %cst_6 = arith.constant dense<0.000000e+00> : vector<64x32xf32>
    %6 = tpu.matmul %0, %5, %cst_6 {dimension_numbers = #tpu.dot_dimension_numbers<[1], [0], [0], [1], [0, 0, 1, 1], [], []>} : vector<64x800xbf16>, vector<800x32xbf16>, vector<64x32xf32> -> vector<64x32xf32>
    %7 = arith.maximumf %3, %6 : vector<64x32xf32>
    %c2 = arith.constant 2 : index
    %c0_7 = arith.constant 0 : index
    %c0_8 = arith.constant 0 : index
    %8 = vector.load %arg3[%c2, %c0_7, %c0_8] : memref<4x800x32xbf16, #tpu.memory_space<vmem>>, vector<1x800x32xbf16>
    %9 = vector.shape_cast %8 : vector<1x800x32xbf16> to vector<800x32xbf16>
    %cst_9 = arith.constant dense<0.000000e+00> : vector<64x32xf32>
    %10 = tpu.matmul %0, %9, %cst_9 {dimension_numbers = #tpu.dot_dimension_numbers<[1], [0], [0], [1], [0, 0, 1, 1], [], []>} : vector<64x800xbf16>, vector<800x32xbf16>, vector<64x32xf32> -> vector<64x32xf32>
    %11 = arith.maximumf %7, %10 : vector<64x32xf32>
    %c3 = arith.constant 3 : index
    %c0_10 = arith.constant 0 : index
    %c0_11 = arith.constant 0 : index
    %12 = vector.load %arg3[%c3, %c0_10, %c0_11] : memref<4x800x32xbf16, #tpu.memory_space<vmem>>, vector<1x800x32xbf16>
    %13 = vector.shape_cast %12 : vector<1x800x32xbf16> to vector<800x32xbf16>
    %cst_12 = arith.constant dense<0.000000e+00> : vector<64x32xf32>
    %14 = tpu.matmul %0, %13, %cst_12 {dimension_numbers = #tpu.dot_dimension_numbers<[1], [0], [0], [1], [0, 0, 1, 1], [], []>} : vector<64x800xbf16>, vector<800x32xbf16>, vector<64x32xf32> -> vector<64x32xf32>
    %15 = arith.maximumf %11, %14 : vector<64x32xf32>
    %c0_13 = arith.constant 0 : index
    %c0_14 = arith.constant 0 : index
    %16 = vector.load %arg2[%c0_13, %c0_14] : memref<64x1xf32, #tpu.memory_space<vmem>>, vector<64x1xf32>
    %17 = vector.broadcast %16 : vector<64x1xf32> to vector<64x32xf32>
    %18 = arith.addf %15, %17 : vector<64x32xf32>
    %cst_15 = arith.constant 0.000000e+00 : f32
    %19 = vector.broadcast %cst_15 : f32 to vector<64x32xf32>
    %20 = arith.maximumf %18, %19 : vector<64x32xf32>
    %21 = arith.truncf %20 : vector<64x32xf32> to vector<64x32xbf16>
    %c0_16 = arith.constant 0 : index
    %c0_17 = arith.constant 0 : index
    %22 = vector.load %arg4[%c0_16, %c0_17] : memref<64x32xbf16, #tpu.memory_space<vmem>>, vector<64x32xbf16>
    tpu.vector_store %arg4[%c0_16, %c0_17], %21 {strides = array<i32>} : memref<64x32xbf16, #tpu.memory_space<vmem>>, vector<64x32xbf16>,
    return
  }
  func.func @transform_0(%arg0: i32) -> (i32, i32) {
    %c0_i32 = arith.constant 0 : i32
    %c0_i32_0 = arith.constant 0 : i32
    %c0_i32_1 = arith.constant 0 : i32
    return %c0_i32, %c0_i32_0 : i32, i32
  }
  func.func @transform_1(%arg0: i32) -> (i32, i32) {
    %c0_i32 = arith.constant 0 : i32
    %c0_i32_0 = arith.constant 0 : i32
    %c0_i32_1 = arith.constant 0 : i32
    return %c0_i32, %c0_i32_0 : i32, i32
  }
  func.func @transform_2(%arg0: i32) -> (i32, i32, i32) {
    %c0_i32 = arith.constant 0 : i32
    %c0_i32_0 = arith.constant 0 : i32
    %c0_i32_1 = arith.constant 0 : i32
    return %c0_i32, %c0_i32_0, %arg0 : i32, i32, i32
  }
  func.func @transform_3(%arg0: i32) -> (i32, i32) {
    %c0_i32 = arith.constant 0 : i32
    %c0_i32_0 = arith.constant 0 : i32
    return %c0_i32, %arg0 : i32, i32
  }
}

module attributes {stable_mosaic.version = 11 : i64} {
  func.func @_mlp_head_kernel(%arg0: i32, %arg1: memref<2x1024xbf16, #tpu.memory_space<vmem>>, %arg2: memref<1024x32xbf16, #tpu.memory_space<vmem>>, %arg3: memref<1x32xf32, #tpu.memory_space<vmem>>, %arg4: memref<32x4xbf16, #tpu.memory_space<vmem>>, %arg5: memref<1x4xf32, #tpu.memory_space<vmem>>, %arg6: memref<2x4xf32, #tpu.memory_space<vmem>>) attributes {dimension_semantics = [#tpu.dimension_semantics<arbitrary>], iteration_bounds = array<i64: 1>, scalar_prefetch = 0 : i64, scratch_operands = 0 : i64, tpu.core_type = #tpu.core_type<tc>, window_params = [{pipeline_mode = #tpu.pipeline_mode<synchronous>, transform_indices = @transform_0, window_bounds = array<i64: 2, 1024>}, {pipeline_mode = #tpu.pipeline_mode<synchronous>, transform_indices = @transform_1, window_bounds = array<i64: 1024, 32>}, {pipeline_mode = #tpu.pipeline_mode<synchronous>, transform_indices = @transform_2, window_bounds = array<i64: 1, 32>}, {pipeline_mode = #tpu.pipeline_mode<synchronous>, transform_indices = @transform_3, window_bounds = array<i64: 32, 4>}, {pipeline_mode = #tpu.pipeline_mode<synchronous>, transform_indices = @transform_4, window_bounds = array<i64: 1, 4>}, {pipeline_mode = #tpu.pipeline_mode<synchronous>, transform_indices = @transform_5, window_bounds = array<i64: 2, 4>}]} {
    %c0 = arith.constant 0 : index
    %c0_0 = arith.constant 0 : index
    %0 = vector.load %arg1[%c0, %c0_0] : memref<2x1024xbf16, #tpu.memory_space<vmem>>, vector<2x1024xbf16>
    %c0_1 = arith.constant 0 : index
    %c0_2 = arith.constant 0 : index
    %1 = vector.load %arg2[%c0_1, %c0_2] : memref<1024x32xbf16, #tpu.memory_space<vmem>>, vector<1024x32xbf16>
    %cst = arith.constant dense<0.000000e+00> : vector<2x32xf32>
    %2 = tpu.matmul %0, %1, %cst {dimension_numbers = #tpu.dot_dimension_numbers<[1], [0], [0], [1], [0, 0, 1, 1], [], []>} : vector<2x1024xbf16>, vector<1024x32xbf16>, vector<2x32xf32> -> vector<2x32xf32>
    %c0_3 = arith.constant 0 : index
    %c0_4 = arith.constant 0 : index
    %3 = vector.load %arg3[%c0_3, %c0_4] : memref<1x32xf32, #tpu.memory_space<vmem>>, vector<1x32xf32>
    %4 = vector.broadcast %3 : vector<1x32xf32> to vector<2x32xf32>
    %5 = arith.addf %2, %4 : vector<2x32xf32>
    %cst_5 = arith.constant 0.000000e+00 : f32
    %6 = vector.broadcast %cst_5 : f32 to vector<2x32xf32>
    %7 = arith.maximumf %5, %6 : vector<2x32xf32>
    %8 = arith.truncf %7 : vector<2x32xf32> to vector<2x32xbf16>
    %c0_6 = arith.constant 0 : index
    %c0_7 = arith.constant 0 : index
    %9 = vector.load %arg4[%c0_6, %c0_7] : memref<32x4xbf16, #tpu.memory_space<vmem>>, vector<32x4xbf16>
    %cst_8 = arith.constant dense<0.000000e+00> : vector<2x4xf32>
    %10 = tpu.matmul %8, %9, %cst_8 {dimension_numbers = #tpu.dot_dimension_numbers<[1], [0], [0], [1], [0, 0, 1, 1], [], []>} : vector<2x32xbf16>, vector<32x4xbf16>, vector<2x4xf32> -> vector<2x4xf32>
    %c0_9 = arith.constant 0 : index
    %c0_10 = arith.constant 0 : index
    %11 = vector.load %arg5[%c0_9, %c0_10] : memref<1x4xf32, #tpu.memory_space<vmem>>, vector<1x4xf32>
    %12 = vector.broadcast %11 : vector<1x4xf32> to vector<2x4xf32>
    %13 = arith.addf %10, %12 : vector<2x4xf32>
    %14 = math.absf %13 : vector<2x4xf32>
    %cst_11 = arith.constant 0.000000e+00 : f32
    %15 = vector.broadcast %cst_11 : f32 to vector<2x4xf32>
    %16 = arith.subf %15, %14 : vector<2x4xf32>
    %17 = math.exp %16 : vector<2x4xf32>
    %cst_12 = arith.constant 0.000000e+00 : f32
    %18 = vector.broadcast %cst_12 : f32 to vector<2x4xf32>
    %19 = arith.cmpf oge, %13, %18 : vector<2x4xf32>
    %cst_13 = arith.constant 1.000000e+00 : f32
    %20 = vector.broadcast %cst_13 : f32 to vector<2x4xf32>
    %21 = arith.addf %20, %17 : vector<2x4xf32>
    %cst_14 = arith.constant 1.000000e+00 : f32
    %22 = vector.broadcast %cst_14 : f32 to vector<2x4xf32>
    %23 = arith.divf %22, %21 : vector<2x4xf32>
    %cst_15 = arith.constant 1.000000e+00 : f32
    %24 = vector.broadcast %cst_15 : f32 to vector<2x4xf32>
    %25 = arith.addf %24, %17 : vector<2x4xf32>
    %26 = arith.divf %17, %25 : vector<2x4xf32>
    %27 = arith.select %19, %23, %26 : vector<2x4xi1>, vector<2x4xf32>
    %c0_16 = arith.constant 0 : index
    %c0_17 = arith.constant 0 : index
    %28 = vector.load %arg6[%c0_16, %c0_17] : memref<2x4xf32, #tpu.memory_space<vmem>>, vector<2x4xf32>
    tpu.vector_store %arg6[%c0_16, %c0_17], %27 {strides = array<i32>} : memref<2x4xf32, #tpu.memory_space<vmem>>, vector<2x4xf32>,
    return
  }
  func.func @transform_0(%arg0: i32) -> (i32, i32) {
    %c0_i32 = arith.constant 0 : i32
    %c0_i32_0 = arith.constant 0 : i32
    %c0_i32_1 = arith.constant 0 : i32
    return %c0_i32, %c0_i32_0 : i32, i32
  }
  func.func @transform_1(%arg0: i32) -> (i32, i32) {
    %c0_i32 = arith.constant 0 : i32
    %c0_i32_0 = arith.constant 0 : i32
    %c0_i32_1 = arith.constant 0 : i32
    return %c0_i32, %c0_i32_0 : i32, i32
  }
  func.func @transform_2(%arg0: i32) -> (i32, i32) {
    %c0_i32 = arith.constant 0 : i32
    %c0_i32_0 = arith.constant 0 : i32
    %c0_i32_1 = arith.constant 0 : i32
    return %c0_i32, %c0_i32_0 : i32, i32
  }
  func.func @transform_3(%arg0: i32) -> (i32, i32) {
    %c0_i32 = arith.constant 0 : i32
    %c0_i32_0 = arith.constant 0 : i32
    %c0_i32_1 = arith.constant 0 : i32
    return %c0_i32, %c0_i32_0 : i32, i32
  }
  func.func @transform_4(%arg0: i32) -> (i32, i32) {
    %c0_i32 = arith.constant 0 : i32
    %c0_i32_0 = arith.constant 0 : i32
    %c0_i32_1 = arith.constant 0 : i32
    return %c0_i32, %c0_i32_0 : i32, i32
  }
  func.func @transform_5(%arg0: i32) -> (i32, i32) {
    %c0_i32 = arith.constant 0 : i32
    %c0_i32_0 = arith.constant 0 : i32
    %c0_i32_1 = arith.constant 0 : i32
    return %c0_i32, %c0_i32_0 : i32, i32
  }
}

</mosaic_0001>

<bundles_post_ra>
// kernel: operator_classifier_forward.3
= control target key start
LH: loop header
LB: loop body
LE: loop exit
PB: predicated region body
PF: predicated region fallthrough
CT: control target
= control target key end

     0   :  { %s937_s12 = smov 0   ;;  %s939_s13 = smov 0   ;;  %s1045_s0 = inlined_call_operand.vmem [shape: bf16[32,25], index: 0, kind: input, shape index: {}]   ;;  %s1046_s1 = inlined_call_operand.vmem [shape: f32[32,1], index: 1, kind: input, shape index: {}]   ;;  %s1047_s2 = inlined_call_operand.vmem [shape: bf16[4,25,288], index: 2, kind: input, shape index: {}]   ;;  %s1048_s3 = inlined_call_operand.vmem [shape: bf16[32,288], index: 3, kind: output, shape index: {}]  }
   0x1   :  { %s941_s14 = smov 0  }
   0x2 LB: > { %s743_s15 = sadd.s32 4294967295, %s913_s14   ;;  %s954_s16 = sadd.s32 1, %s913_s14   ;;  %s913_s14 = sphi %s941_s14, %s1052_s14   ;;  %s909_s13 = sphi %s939_s13, %s1051_s13   ;;  %s905_s12 = sphi %s937_s12, %s1050_s12  }
   0x3   : > { %s59_s17 = ssub.s32 %s913_s14, %s954_s16  ;;  %s62_s18 = sadd.s32 1, %s909_s13 }
   0x4   : > { %p60_p0 = scmp.eq.s32.totalorder %s59_s17, 0  ;;  %p69_p1 = scmp.ne.s32.totalorder %s909_s13, %s905_s12 }
   0x5   : > { %p70_p2 = scmp.eq.s32.totalorder %s913_s14, 0  ;;  %p99_p3 = scmp.eq.s32.totalorder %s743_s15, 2 }
   0x6   : > { %s965_s19 = scalar_select %p60_p0, %s909_s13, %s62_s18  }
   0x7   : > { %p71_p4 = por %p70_p2, %p69_p1  ;;  %p967_p5 = por %p99_p3, %p69_p1 }
   0x8   : > { %p746_p6 = scmp.ge.s32.totalorder %s913_s14, 3 }
   0xa   : > { %127 = sbr.rel (%p746_p6) target bundleno = 31 (0x1f), region = 24 }
  0x11   : > { %130 = sbr.rel (!%p71_p4) target bundleno = 31 (0x1f), region = 28  ;;  %s132_s21 = sand.u32 (%p71_p4), 1, %s909_s13  }
  0x12   : > { %s748_s22 = sshll.u32 (%p71_p4), %s913_s14, 2  ;;  %s747_s23 = sshll.u32 (%p71_p4), %s132_s21, 6 }
  0x13   : > { %s977_s26 = scalar_lea.vmem (%p71_p4), %s1047_s2, %s748_s22  ;;  %s134_s27 = scalar_lea.vmem (%p71_p4), [#allocation2], %s747_s23 }
  0x14   : > { %v152_v0 = vld [vmem:[%s977_s26] sm:$0xf] (%p71_p4)  ;;  %v154_v1 = vld [vmem:[%s977_s26 + $0xc] sm:$0xf] (%p71_p4)  ;;  %v156_v2 = vld [vmem:[%s977_s26 + $0x18] sm:$0xf] (%p71_p4) }
  0x15   : > { %153 = vst [vmem:[%s134_s27] sm:$0xf] (%p71_p4), %v152_v0  ;;  %155 = vst [vmem:[%s134_s27 + $0x4] sm:$0xf] (%p71_p4), %v154_v1  ;;  %v158_v3 = vld [vmem:[%s977_s26 + $0x24] sm:$0xf] (%p71_p4) }
  0x16   : > { %v160_v4 = vld [vmem:[%s977_s26 + $0x30] sm:$0xf] (%p71_p4)  ;;  %157 = vst [vmem:[%s134_s27 + $0x8] sm:$0xf] (%p71_p4), %v156_v2  ;;  %159 = vst [vmem:[%s134_s27 + $0xc] sm:$0xf] (%p71_p4), %v158_v3 }
  0x17   : > { %161 = vst [vmem:[%s134_s27 + $0x10] sm:$0xf] (%p71_p4), %v160_v4  ;;  %v162_v5 = vld [vmem:[%s977_s26 + $0x3c] sm:$0xf] (%p71_p4)  ;;  %v164_v6 = vld [vmem:[%s977_s26 + $0x48] sm:$0xf] (%p71_p4) }
  0x18   : > { %v166_v7 = vld [vmem:[%s977_s26 + $0x54] sm:$0xf]  ;;  %163 = vst [vmem:[%s134_s27 + $0x14] sm:$0xf] %v162_v5  ;;  %165 = vst [vmem:[%s134_s27 + $0x18] sm:$0xf] %v164_v6 }
  0x19   : > { %167 = vst [vmem:[%s134_s27 + $0x1c] sm:$0xf] %v166_v7  ;;  %v168_v8 = vld [vmem:[%s977_s26 + $0x60] sm:$0xf]  ;;  %v170_v9 = vld [vmem:[%s977_s26 + $0x6c] sm:$0xf] }
  0x1a   : > { %v172_v10 = vld [vmem:[%s977_s26 + $0x78] sm:$0xf]  ;;  %169 = vst [vmem:[%s134_s27 + $0x20] sm:$0xf] %v168_v8  ;;  %171 = vst [vmem:[%s134_s27 + $0x24] sm:$0xf] %v170_v9 }
  0x1b   : > { %173 = vst [vmem:[%s134_s27 + $0x28] sm:$0xf] %v172_v10  ;;  %v174_v11 = vld [vmem:[%s977_s26 + $0x84] sm:$0xf]  ;;  %v176_v12 = vld [vmem:[%s977_s26 + $0x90] sm:$0xf] }
  0x1c   : > { %v178_v13 = vld [vmem:[%s977_s26 + $0x9c] sm:$0xf]  ;;  %175 = vst [vmem:[%s134_s27 + $0x2c] sm:$0xf] %v174_v11  ;;  %177 = vst [vmem:[%s134_s27 + $0x30] sm:$0xf] %v176_v12 }
  0x1d   : > { %179 = vst [vmem:[%s134_s27 + $0x34] sm:$0xf] %v178_v13  ;;  %v180_v14 = vld [vmem:[%s977_s26 + $0xa8] sm:$0xf]  ;;  %v182_v15 = vld [vmem:[%s977_s26 + $0xb4] sm:$0xf] }
  0x1e   : > { %181 = vst [vmem:[%s134_s27 + $0x38] sm:$0xf] %v180_v14  ;;  %183 = vst [vmem:[%s134_s27 + $0x3c] sm:$0xf] %v182_v15 }
  0x1f PF: > { %p749_p7 = scmp.ge.s32.totalorder %s913_s14, 1  ;;  %p237_p8 = scmp.lt.s32.totalorder %s913_s14, 4 }
  0x21   : > { %p238_p9 = pnand %p749_p7, %p237_p8 }
  0x22   : > { %s244_s28 = sand.u32 (!%p238_p9), 1, %s905_s12   ;;  %vm303_vm0 = vcmask (!%p238_p9), 1043456   ;;  %vm304_vm1 = vcmask (!%p238_p9), 1044480   ;;  %v915_v16 = vmov (!%p238_p9), 65535   ;;  %v885_v18 = vld [vmem:[%s1045_s0] sm:$0xff] (!%p238_p9)   ;;  %vm296_vm2 = vcmask (!%p238_p9), 203776  }
  0x23   : > { %241 = sbr.rel (%p238_p9) target bundleno = 289 (0x121), region = 69  ;;  %s750_s29 = sshll.u32 (!%p238_p9), %s244_s28, 6  ;;  %v305_v17 = vsel (!%p238_p9), %vm303_vm0, 4294967295, %v915_v16  ;;  %825 = vmatprep.mubr.msk.bf16.mxu0 (!%p238_p9), %vm296_vm2, %v885_v18  ;;  %833 = vmatprep.mubr.msk.bf16.mxu1 (!%p238_p9), %vm296_vm2, %v885_v18  ;;  %v916_v22 = vmov (!%p238_p9), 0   ;;  %v886_v26 = vld [vmem:[%s1045_s0 + $0x8] sm:$0xff] (!%p238_p9)   ;;  %v577_v32 = vld [vmem:[%s1046_s1 + $0x10] sm:$0xff] (!%p238_p9) }
  0x24   : > { %s246_s5 = scalar_lea.vmem (!%p238_p9), [#allocation2], %s750_s29  ;;  %v306_v21 = vsel (!%p238_p9), %vm304_vm1, %v305_v17, 0  ;;  %880 = vset.pattern.permute.xlu1 (!%p238_p9), %v916_v22  ;;  %879 = vset.pattern.permute.xlu0 (!%p238_p9), %v916_v22  ;;  %v575_v33 = vld [vmem:[%s1046_s1] sm:$0xff] (!%p238_p9)  ;;  %v578_v36 = vld [vmem:[%s1046_s1 + $0x18] sm:$0xff] (!%p238_p9)  ;;  %v576_v37 = vld [vmem:[%s1046_s1 + $0x8] sm:$0xff] (!%p238_p9)  ;;  %s751_s23 = sshll.u32 (!%p238_p9), %s244_s28, 4 }
  0x25   : > { %v881_v19 = vld [vmem:[%s246_s5] sm:$0xff] (!%p238_p9)   ;;  %v882_v20 = vld [vmem:[%s246_s5 + $0x10] sm:$0xff] (!%p238_p9)   ;;  %v883_v23 = vld [vmem:[%s246_s5 + $0x8] sm:$0x1f] (!%p238_p9)   ;;  %591 = vperm.xlu1 (!%p238_p9), %880, %v577_v32   ;;  %581 = vperm.xlu0 (!%p238_p9), %879, %v575_v33   ;;  %s265_s24 = scalar_lea.vmem (!%p238_p9), [#allocation3], %s751_s23 }
  0x26   : > { %821 = vmatprep.subr.bf16.mxu0 (!%p238_p9), %v881_v19  ;;  %829 = vmatprep.subr.bf16.mxu1 (!%p238_p9), %v882_v20  ;;  %v884_v24 = vld [vmem:[%s246_s5 + $0x18] sm:$0x1f] (!%p238_p9)   ;;  %v308_v25 = vand.u32 (!%p238_p9), %v883_v23, %v306_v21  ;;  %v887_v28 = vld [vmem:[%s246_s5 + $0x20] sm:$0xff] (!%p238_p9)   ;;  %v888_v29 = vld [vmem:[%s246_s5 + $0x30] sm:$0xff] (!%p238_p9)  }
  0x27   : > { %822 = vmatpush3.bf16.msra.mxu0 (!%p238_p9), %v881_v19  ;;  %830 = vmatpush3.bf16.msra.mxu1 (!%p238_p9), %v882_v20  ;;  %v376_v27 = vand.u32 (!%p238_p9), %v884_v24, %v306_v21  ;;  %v889_v30 = vld [vmem:[%s246_s5 + $0x28] sm:$0x1f] (!%p238_p9)   ;;  %v890_v31 = vld [vmem:[%s246_s5 + $0x38] sm:$0x1f] (!%p238_p9)  }
  0x28   : > { %823 = vmatprep.subr.bf16.mxu0 (!%p238_p9), %v308_v25  ;;  %v448_v34 = vand.u32 (!%p238_p9), %v889_v30, %v306_v21  ;;  %v520_v35 = vand.u32 (!%p238_p9), %v890_v31, %v306_v21 }
  0x29   : > { %831 = vmatprep.subr.bf16.mxu1 (!%p238_p9), %v376_v27  ;;  %596 = vperm.xlu1 (!%p238_p9), %880, %v578_v36  }
  0x2a   : > { %586 = vperm.xlu0 %879, %v576_v37   ;;  %s787_s25 = sshll.u32 (%p967_p5), %s743_s15, 2 }
  0x2b   : > { %824 = vmatpush3.bf16.msra.mxu0 %v308_v25  ;;  %832 = vmatpush3.bf16.msra.mxu1 %v376_v27  ;;  %s635_s27 = scalar_lea.vmem (%p967_p5), %s1048_s3, %s787_s25 }
  0x2c   : > { %837 = vmatprep.subr.bf16.mxu0 %v887_v28  ;;  %845 = vmatprep.subr.bf16.mxu1 %v888_v29 }
  0x2e   : > { %826 = vmatmul.mubr.msk.bf16.vlgmr.msra.gmra.mrb[0].mxu0 %vm296_vm2, %v886_v26  ;;  %834 = vmatmul.mubr.msk.bf16.vlgmr.msra.gmra.mrb[0].mxu1 %vm296_vm2, %v886_v26 }
  0x2f   : > { %838 = vmatpush3.bf16.msra.mxu0 %v887_v28  ;;  %846 = vmatpush3.bf16.msra.mxu1 %v888_v29 }
  0x30   : > { %839 = vmatprep.subr.bf16.mxu0 %v448_v34  ;;  %847 = vmatprep.subr.bf16.mxu1 %v520_v35 }
  0x31   : > { %841 = vmatprep.mubr.msk.bf16.mxu0 %vm296_vm2, %v885_v18  ;;  %849 = vmatprep.mubr.msk.bf16.mxu1 %vm296_vm2, %v885_v18 }
  0x33   : > { %840 = vmatpush3.bf16.msra.mxu0 %v448_v34  ;;  %848 = vmatpush3.bf16.msra.mxu1 %v520_v35 }
  0x36   : > { %842 = vmatmul.mubr.msk.bf16.vlgmr.msra.gmra.mrb[4].mxu0 %vm296_vm2, %v886_v26  ;;  %850 = vmatmul.mubr.msk.bf16.vlgmr.msra.gmra.mrb[4].mxu1 %vm296_vm2, %v886_v26 }
  0xa4   : > { %v592_v50 = vpop.permute.xlu1 %591  ;;  %v582_v51 = vpop.permute.xlu0 %581 }
  0xa8   : > { %v597_v6 = vpop.permute.xlu1 %596 }
  0xa9   : > { %v587_v8 = vpop.permute.xlu0 %586 }
 0x101   : > { %v827_v38 = vpop.f32.mrb[0].mxu0  ;;  %v835_v39 = vpop.f32.mrb[0].mxu1 }
 0x102   : > { %v344_v40 = vpop.f32.mrb[1].mxu0  ;;  %v429_v41 = vmax.f32 %v827_v38, %v835_v39  ;;  %v412_v42 = vpop.f32.mrb[1].mxu1 }
 0x103   : > { %v828_v43 = vpop.f32.mrb[2].mxu0  ;;  %v427_v44 = vmax.f32 %v344_v40, %v412_v42  ;;  %v836_v45 = vpop.f32.mrb[2].mxu1 }
 0x104   : > { %v347_v46 = vpop.f32.mrb[3].mxu0  ;;  %v430_v47 = vmax.f32 %v828_v43, %v836_v45  ;;  %v415_v48 = vpop.f32.mrb[3].mxu1 }
 0x105   : > { %v428_v49 = vmax.f32 %v347_v46, %v415_v48 }
 0x109   : > { %v843_v52 = vpop.f32.mrb[4].mxu0  ;;  %v851_v54 = vpop.f32.mrb[4].mxu1 }
 0x10a   : > { %v501_v53 = vmax.f32 %v429_v41, %v843_v52  ;;  %v484_v55 = vpop.f32.mrb[5].mxu0  ;;  %v556_v57 = vpop.f32.mrb[5].mxu1 }
 0x10b   : > { %v499_v56 = vmax.f32 %v427_v44, %v484_v55  ;;  %v844_v58 = vpop.f32.mrb[6].mxu0  ;;  %v852_v61 = vpop.f32.mrb[6].mxu1 }
 0x10c   : > { %v573_v59 = vmax.f32 %v501_v53, %v851_v54  ;;  %v502_v60 = vmax.f32 %v430_v47, %v844_v58  ;;  %v487_v62 = vpop.f32.mrb[7].mxu0  ;;  %v559_v1 = vpop.f32.mrb[7].mxu1 }
 0x10d   : > { %v571_v63 = vmax.f32 %v499_v56, %v556_v57  ;;  %v500_v0 = vmax.f32 %v428_v49, %v487_v62 }
 0x10e   : > { %v601_v2 = vadd.f32 %v592_v50, %v573_v59  ;;  %v574_v3 = vmax.f32 %v502_v60, %v852_v61 }
 0x10f   : > { %v599_v4 = vadd.f32 %v582_v51, %v571_v63  ;;  %v572_v5 = vmax.f32 %v500_v0, %v559_v1 }
 0x110   : > { %v602_v7 = vadd.f32 %v597_v6, %v574_v3  ;;  %v605_v10 = vmax.f32 %v601_v2, 0.0 }
 0x111   : > { %v600_v9 = vadd.f32 %v587_v8, %v572_v5  ;;  %v603_v12 = vmax.f32 %v599_v4, 0.0  ;;  %633 = sbr.rel (!%p967_p5) target bundleno = 289 (0x121), region = 77 }
 0x112   : > { %v606_v11 = vmax.f32 %v602_v7, 0.0 }
 0x113   : > { %v604_v13 = vmax.f32 %v600_v9, 0.0 }
 0x114   : > { %v802_v14 = vpack.c.bf16 %v606_v11, %v605_v10 }
 0x115   : > { %v797_v15 = vpack.c.bf16 %v604_v13, %v603_v12 }
 0x116   : > { %804 = vst [vmem:[%s265_s24 + $0x8] sm:$0xff] %v802_v14  }
 0x117   : > { %798 = vst [vmem:[%s265_s24] sm:$0xff] %v797_v15  }
 0x11d   : > { %v655_v18 = vld [vmem:[%s265_s24 + $0x8] sm:$0xf]  ;;  %v657_v19 = vld [vmem:[%s265_s24 + $0xc] sm:$0xf] }
 0x11e   : > { %v651_v16 = vld [vmem:[%s265_s24] sm:$0xf]  ;;  %v653_v17 = vld [vmem:[%s265_s24 + $0x4] sm:$0xf]  ;;  %656 = vst [vmem:[%s635_s27 + $0x18] sm:$0xf] %v655_v18 }
 0x11f   : > { %652 = vst [vmem:[%s635_s27] sm:$0xf] %v651_v16  ;;  %654 = vst [vmem:[%s635_s27 + $0xc] sm:$0xf] %v653_v17 }
 0x120   : > { %658 = vst [vmem:[%s635_s27 + $0x24] sm:$0xf] %v657_v19 }
 0x121 PF: > { %p10_p10 = scmp.ge.s32.totalorder %s954_s16, 5   ;;  %s1050_s12 = smov %s909_s13 }
 0x122   : > { %s1051_s13 = smov %s965_s19  ;;  %s1052_s14 = smov %s954_s16 }
 0x123   :  { %12 = sbr.rel (!%p10_p10) target bundleno = 2 (0x2), region = 152 }

// kernel: operator_classifier_forward.4
= control target key start
LH: loop header
LB: loop body
LE: loop exit
PB: predicated region body
PF: predicated region fallthrough
CT: control target
= control target key end

     0   :  { %vm587_vm0 = vcmask 261120   ;;  %vm2963_vm1 = vcmask 257024   ;;  %s5571_s2 = inlined_call_operand.vmem [shape: bf16[4,800,32], index: 2, kind: input, shape index: {}]   ;;  %s5572_s0 = inlined_call_operand.vmem [shape: bf16[64,800], index: 0, kind: input, shape index: {}]   ;;  %s5573_s1 = inlined_call_operand.vmem [shape: f32[64,1], index: 1, kind: input, shape index: {}]   ;;  %s5574_s3 = inlined_call_operand.vmem [shape: bf16[64,32], index: 3, kind: output, shape index: {}]  }
   0x1   :  { %v4107_v0 = vld [vmem:[%s5571_s2 + $0x40] sm:$0xff]   ;;  %v4111_v4 = vld [vmem:[%s5571_s2 + $0x48] sm:$0xff]   ;;  %v4115_v8 = vld [vmem:[%s5571_s2 + $0x50] sm:$0xff]  }
   0x2   :  { %v4108_v1 = vld [vmem:[%s5571_s2 + $0xc0] sm:$0xff]   ;;  %3536 = vmatprep.subr.bf16.mxu0 %v4107_v0  ;;  %v4112_v5 = vld [vmem:[%s5571_s2 + $0xc8] sm:$0xff]   ;;  %v4116_v9 = vld [vmem:[%s5571_s2 + $0xd0] sm:$0xff]  }
   0x3   :  { %v4109_v2 = vld [vmem:[%s5571_s2] sm:$0xff]   ;;  %3576 = vmatprep.subr.bf16.mxu1 %v4108_v1  ;;  %v4113_v6 = vld [vmem:[%s5571_s2 + $0x8] sm:$0xff]   ;;  %v4117_v10 = vld [vmem:[%s5571_s2 + $0x10] sm:$0xff]  }
   0x4   :  { %v4110_v3 = vld [vmem:[%s5571_s2 + $0x80] sm:$0xff]   ;;  %3537 = vmatpush3.bf16.msra.mxu0 %v4109_v2  ;;  %v4114_v7 = vld [vmem:[%s5571_s2 + $0x88] sm:$0xff]   ;;  %v4118_v11 = vld [vmem:[%s5571_s2 + $0x90] sm:$0xff]  }
   0x5   :  { %3577 = vmatpush3.bf16.msra.mxu1 %v4110_v3  ;;  %3538 = vmatprep.subr.bf16.mxu0 %v4111_v4  ;;  %v4119_v12 = vld [vmem:[%s5571_s2 + $0x58] sm:$0xff]   ;;  %v4123_v16 = vld [vmem:[%s5571_s2 + $0x60] sm:$0xff]   ;;  %v4127_v20 = vld [vmem:[%s5571_s2 + $0x68] sm:$0xff]  }
   0x6   :  { %3578 = vmatprep.subr.bf16.mxu1 %v4112_v5  ;;  %v4120_v13 = vld [vmem:[%s5571_s2 + $0xd8] sm:$0xff]   ;;  %v4124_v17 = vld [vmem:[%s5571_s2 + $0xe0] sm:$0xff]   ;;  %v4128_v21 = vld [vmem:[%s5571_s2 + $0xe8] sm:$0xff]  }
   0x7   :  { %v4121_v14 = vld [vmem:[%s5571_s2 + $0x18] sm:$0xff]   ;;  %v4125_v18 = vld [vmem:[%s5571_s2 + $0x20] sm:$0xff]   ;;  %v4129_v22 = vld [vmem:[%s5571_s2 + $0x28] sm:$0xff]  }
   0x8   :  { %3539 = vmatpush3.bf16.msra.mxu0 %v4113_v6  ;;  %v4122_v15 = vld [vmem:[%s5571_s2 + $0x98] sm:$0xff]   ;;  %v4126_v19 = vld [vmem:[%s5571_s2 + $0xa0] sm:$0xff]   ;;  %v4130_v23 = vld [vmem:[%s5571_s2 + $0xa8] sm:$0xff]  }
   0x9   :  { %3579 = vmatpush3.bf16.msra.mxu1 %v4114_v7  ;;  %3540 = vmatprep.subr.bf16.mxu0 %v4115_v8  ;;  %v4131_v24 = vld [vmem:[%s5571_s2 + $0x70] sm:$0xff]   ;;  %v4135_v28 = vld [vmem:[%s5571_s2 + $0x78] sm:$0xff]   ;;  %v4495_v32 = vld [vmem:[%s5572_s0 + $0x4] ss:$28 sps:$4 sm:$0xff]  }
   0xa   :  { %3580 = vmatprep.subr.bf16.mxu1 %v4116_v9  ;;  %v4132_v25 = vld [vmem:[%s5571_s2 + $0xf0] sm:$0xff]   ;;  %v4136_v29 = vld [vmem:[%s5571_s2 + $0xf8] sm:$0xff]   ;;  %v4500_v33 = vld [vmem:[%s5572_s0 + $0xc] ss:$28 sps:$4 sm:$0xff]   ;;  %632 = vmatprep.mubr.bf16.mxu0 %v4495_v32 }
   0xb   :  { %v4133_v26 = vld [vmem:[%s5571_s2 + $0x30] sm:$0xff]   ;;  %v4137_v30 = vld [vmem:[%s5571_s2 + $0x38] sm:$0xff]   ;;  %v4511_v35 = vld [vmem:[%s5572_s0 + $0x8] ss:$28 sps:$4 sm:$0xff]   ;;  %697 = vmatprep.mubr.bf16.mxu1 %v4500_v33 }
   0xc   :  { %3541 = vmatpush3.bf16.msra.mxu0 %v4117_v10  ;;  %v4134_v27 = vld [vmem:[%s5571_s2 + $0xb0] sm:$0xff]   ;;  %v4138_v31 = vld [vmem:[%s5571_s2 + $0xb8] sm:$0xff]   ;;  %v4145_v36 = vld [vmem:[%s5571_s2 + $0x140] sm:$0xff]  }
   0xd   :  { %3581 = vmatpush3.bf16.msra.mxu1 %v4118_v11  ;;  %3542 = vmatprep.subr.bf16.mxu0 %v4119_v12  ;;  %v4506_v34 = vld [vmem:[%s5572_s0] ss:$28 sps:$4 sm:$0xff]   ;;  %v4147_v38 = vld [vmem:[%s5571_s2 + $0x148] sm:$0xff]   ;;  %v4545_v43 = vld [vmem:[%s5572_s0 + $0x38] ss:$28 sps:$4 sm:$0xff]  }
   0xe   :  { %3582 = vmatprep.subr.bf16.mxu1 %v4120_v13  ;;  %v4146_v37 = vld [vmem:[%s5571_s2 + $0x100] sm:$0xff]   ;;  %v4148_v39 = vld [vmem:[%s5571_s2 + $0x108] sm:$0xff]   ;;  %v4531_v40 = vld [vmem:[%s5572_s0 + $0x3c] ss:$28 sps:$4 sm:$0xff]  }
   0xf   :  { %v4536_v41 = vld [vmem:[%s5572_s0 + $0x44] ss:$28 sps:$4 sm:$0xff]   ;;  %v4156_v45 = vld [vmem:[%s5571_s2 + $0x150] sm:$0xff]   ;;  %v4158_v47 = vld [vmem:[%s5571_s2 + $0x158] sm:$0xff]  }
  0x10   :  { %3543 = vmatpush3.bf16.msra.mxu0 %v4121_v14  ;;  %v4153_v42 = vld [vmem:[%s5571_s2 + $0x180] sm:$0xff]   ;;  %v4157_v46 = vld [vmem:[%s5571_s2 + $0x110] sm:$0xff]   ;;  %v4159_v48 = vld [vmem:[%s5571_s2 + $0x118] sm:$0xff]  }
  0x11   :  { %3583 = vmatpush3.bf16.msra.mxu1 %v4122_v15  ;;  %3544 = vmatprep.subr.bf16.mxu0 %v4123_v16  ;;  %v4551_v44 = vld [vmem:[%s5572_s0 + $0x40] ss:$28 sps:$4 sm:$0xff]   ;;  %v4570_v49 = vld [vmem:[%s5572_s0 + $0x74] ss:$28 sps:$4 sm:$0xff]   ;;  %v4168_v55 = vld [vmem:[%s5571_s2 + $0x168] sm:$0xff]  }
  0x12   :  { %3584 = vmatprep.subr.bf16.mxu1 %v4124_v17  ;;  %v4575_v50 = vld [vmem:[%s5572_s0 + $0x7c] ss:$28 sps:$4 sm:$0xff]   ;;  %v4580_v51 = vld [vmem:[%s5572_s0 + $0x70] ss:$28 sps:$4 sm:$0xff]   ;;  %v4166_v53 = vld [vmem:[%s5571_s2 + $0x160] sm:$0xff]  }
  0x13   :  { %v4585_v52 = vld [vmem:[%s5572_s0 + $0x78] ss:$28 sps:$4 sm:$0xff]   ;;  %v4167_v54 = vld [vmem:[%s5571_s2 + $0x120] sm:$0xff]   ;;  %v4169_v56 = vld [vmem:[%s5571_s2 + $0x128] sm:$0xff]  }
  0x14   :  { %3545 = vmatpush3.bf16.msra.mxu0 %v4125_v18  ;;  %v4606_v57 = vld [vmem:[%s5572_s0 + $0xac] ss:$28 sps:$4 sm:$0xff]   ;;  %v4611_v58 = vld [vmem:[%s5572_s0 + $0xb4] ss:$28 sps:$4 sm:$0xff]   ;;  %v4179_v0 = vld [vmem:[%s5571_s2 + $0x178] sm:$0xff]  }
  0x15   :  { %3585 = vmatpush3.bf16.msra.mxu1 %v4126_v19  ;;  %3546 = vmatprep.subr.bf16.mxu0 %v4127_v20  ;;  %v4174_v59 = vld [vmem:[%s5571_s2 + $0x188] sm:$0xff]   ;;  %v4177_v62 = vld [vmem:[%s5571_s2 + $0x170] sm:$0xff]   ;;  %v4180_v1 = vld [vmem:[%s5571_s2 + $0x138] sm:$0xff]  }
  0x16   :  { %3586 = vmatprep.subr.bf16.mxu1 %v4128_v21  ;;  %v4621_v60 = vld [vmem:[%s5572_s0 + $0xa8] ss:$28 sps:$4 sm:$0xff]   ;;  %v4626_v61 = vld [vmem:[%s5572_s0 + $0xb0] ss:$28 sps:$4 sm:$0xff]   ;;  %v4650_v3 = vld [vmem:[%s5572_s0 + $0x18] ss:$28 sps:$4 sm:$0xff]  }
  0x17   :  { %v4178_v63 = vld [vmem:[%s5571_s2 + $0x130] sm:$0xff]   ;;  %v4190_v10 = vld [vmem:[%s5571_s2 + $0x258] sm:$0xff]   ;;  %v4695_v14 = vld [vmem:[%s5572_s0 + $0x4c] ss:$28 sps:$4 sm:$0xff]  }
  0x18   :  { %3547 = vmatpush3.bf16.msra.mxu0 %v4129_v22  ;;  %v4645_v2 = vld [vmem:[%s5572_s0 + $0x14] ss:$28 sps:$4 sm:$0xff]   ;;  %v4191_v11 = vld [vmem:[%s5571_s2 + $0x1d8] sm:$0xff]   ;;  %v4196_v15 = vld [vmem:[%s5571_s2 + $0x260] sm:$0xff]  }
  0x19   :  { %3587 = vmatpush3.bf16.msra.mxu1 %v4130_v23  ;;  %3548 = vmatprep.subr.bf16.mxu0 %v4131_v24  ;;  %v4655_v4 = vld [vmem:[%s5572_s0 + $0x10] ss:$28 sps:$4 sm:$0xff]   ;;  %v4192_v12 = vld [vmem:[%s5571_s2 + $0x218] sm:$0xff]   ;;  %v4704_v16 = vld [vmem:[%s5572_s0 + $0x48] ss:$28 sps:$4 sm:$0xff]  }
  0x1a   :  { %3588 = vmatprep.subr.bf16.mxu1 %v4132_v25  ;;  %v4185_v5 = vld [vmem:[%s5571_s2 + $0x250] sm:$0xff]   ;;  %v4193_v13 = vld [vmem:[%s5571_s2 + $0x198] sm:$0xff]   ;;  %v4198_v17 = vld [vmem:[%s5571_s2 + $0x1e0] sm:$0xff]  }
  0x1b   :  { %v4666_v6 = vld [vmem:[%s5572_s0 + $0x50] ss:$28 sps:$4 sm:$0xff]   ;;  %v4199_v18 = vld [vmem:[%s5571_s2 + $0x220] sm:$0xff]  }
  0x1c   :  { %3549 = vmatpush3.bf16.msra.mxu0 %v4133_v26  ;;  %v4187_v7 = vld [vmem:[%s5571_s2 + $0x1d0] sm:$0xff]   ;;  %v4200_v19 = vld [vmem:[%s5571_s2 + $0x1a0] sm:$0xff]   ;;  %v4201_v20 = vld [vmem:[%s5571_s2 + $0x268] sm:$0xff]  }
  0x1d   :  { %3589 = vmatpush3.bf16.msra.mxu1 %v4134_v27  ;;  %3550 = vmatprep.subr.bf16.mxu0 %v4135_v28  ;;  %v4188_v8 = vld [vmem:[%s5571_s2 + $0x210] sm:$0xff]   ;;  %v4202_v21 = vld [vmem:[%s5571_s2 + $0x1e8] sm:$0xff]   ;;  %v4731_v24 = vld [vmem:[%s5572_s0 + $0x84] ss:$28 sps:$4 sm:$0xff]  }
  0x1e   :  { %3590 = vmatprep.subr.bf16.mxu1 %v4136_v29  ;;  %v4189_v9 = vld [vmem:[%s5571_s2 + $0x190] sm:$0xff]   ;;  %v4203_v22 = vld [vmem:[%s5571_s2 + $0x228] sm:$0xff]   ;;  %v4739_v26 = vld [vmem:[%s5572_s0 + $0x80] ss:$28 sps:$4 sm:$0xff]  }
  0x1f   :  { %v4204_v23 = vld [vmem:[%s5571_s2 + $0x1a8] sm:$0xff]   ;;  %v4207_v25 = vld [vmem:[%s5571_s2 + $0x270] sm:$0xff]  }
  0x20   :  { %3551 = vmatpush3.bf16.msra.mxu0 %v4137_v30  ;;  %v4209_v27 = vld [vmem:[%s5571_s2 + $0x1f0] sm:$0xff]   ;;  %v4755_v30 = vld [vmem:[%s5572_s0 + $0x88] ss:$28 sps:$4 sm:$0xff]  }
  0x21   :  { %3591 = vmatpush3.bf16.msra.mxu1 %v4138_v31  ;;  %3616 = vmatprep.subr.bf16.mxu0 %v4145_v36  ;;  %v4210_v28 = vld [vmem:[%s5571_s2 + $0x230] sm:$0xff]   ;;  %v4213_v31 = vld [vmem:[%s5571_s2 + $0x278] sm:$0xff]  }
  0x22   :  { %4040 = vmatprep.subr.bf16.mxu1 %v4153_v42  ;;  %v4211_v29 = vld [vmem:[%s5571_s2 + $0x1b0] sm:$0xff]   ;;  %v4765_v36 = vld [vmem:[%s5572_s0 + $0xc0] ss:$28 sps:$4 sm:$0xff]  }
  0x23   :  { %633 = vmatmul.mubr.bf16.vlgmr.msra.gmra.mrb[0].mxu0 %v4506_v34 }
  0x24   :  { %698 = vmatmul.mubr.bf16.vlgmr.msra.gmra.mrb[0].mxu1 %v4511_v35  ;;  %3617 = vmatpush3.bf16.msra.mxu0 %v4146_v37  ;;  %v4215_v37 = vld [vmem:[%s5571_s2 + $0x1f8] sm:$0xff]  }
  0x25   :  { %3618 = vmatprep.subr.bf16.mxu0 %v4147_v38  ;;  %640 = vmatprep.mubr.bf16.mxu0 %v4531_v40  ;;  %v4216_v38 = vld [vmem:[%s5571_s2 + $0x238] sm:$0xff]  }
  0x26   :  { %705 = vmatprep.mubr.bf16.mxu1 %v4536_v41  ;;  %4041 = vmatpush3.bf16.msra.mxu1 %v4153_v42  ;;  %v4782_v42 = vld [vmem:[%s5572_s0 + $0xbc] ss:$28 sps:$4 sm:$0xff]  }
  0x27   :  { %4042 = vmatprep.subr.bf16.mxu1 %v4174_v59 }
  0x28   :  { %3619 = vmatpush3.bf16.msra.mxu0 %v4148_v39  ;;  %v4217_v39 = vld [vmem:[%s5571_s2 + $0x1b8] sm:$0xff]  }
  0x29   :  { %3620 = vmatprep.subr.bf16.mxu0 %v4156_v45  ;;  %v4220_v45 = vld [vmem:[%s5571_s2 + $0x280] sm:$0xff]  }
  0x2a   :  { %4043 = vmatpush3.bf16.msra.mxu1 %v4174_v59  ;;  %v4229_v59 = vld [vmem:[%s5571_s2 + $0x2d0] sm:$0xff]  }
  0x2b   :  { %641 = vmatmul.mubr.bf16.gmra.mrb[4].mxu0 %v4545_v43  ;;  %3702 = vmatprep.subr.bf16.mxu1 %v4185_v5  ;;  %v4242_v5 = vld [vmem:[%s5571_s2 + $0x318] sm:$0xff]  }
  0x2c   :  { %706 = vmatmul.mubr.bf16.gmra.mrb[4].mxu1 %v4551_v44  ;;  %3621 = vmatpush3.bf16.msra.mxu0 %v4157_v46  ;;  %v4790_v46 = vld [vmem:[%s5572_s0 + $0xb8] ss:$28 sps:$4 sm:$0xff]  }
  0x2d   :  { %3622 = vmatprep.subr.bf16.mxu0 %v4158_v47  ;;  %648 = vmatprep.mubr.bf16.mxu0 %v4570_v49  ;;  %v4222_v47 = vld [vmem:[%s5571_s2 + $0x200] sm:$0xff]  }
  0x2e   :  { %713 = vmatprep.mubr.bf16.mxu1 %v4575_v50 }
  0x30   :  { %3623 = vmatpush3.bf16.msra.mxu0 %v4159_v48  ;;  %v4223_v48 = vld [vmem:[%s5571_s2 + $0x240] sm:$0xff]  }
  0x31   :  { %3624 = vmatprep.subr.bf16.mxu0 %v4166_v53  ;;  %v4224_v53 = vld [vmem:[%s5571_s2 + $0x1c0] sm:$0xff]  }
  0x33   :  { %649 = vmatmul.mubr.bf16.gmra.mrb[8].mxu0 %v4580_v51 }
  0x34   :  { %714 = vmatmul.mubr.bf16.gmra.mrb[8].mxu1 %v4585_v52  ;;  %3625 = vmatpush3.bf16.msra.mxu0 %v4167_v54  ;;  %v4225_v54 = vld [vmem:[%s5571_s2 + $0x288] sm:$0xff]  }
  0x35   :  { %3626 = vmatprep.subr.bf16.mxu0 %v4168_v55  ;;  %656 = vmatprep.mubr.bf16.mxu0 %v4606_v57  ;;  %v4226_v55 = vld [vmem:[%s5571_s2 + $0x208] sm:$0xff]  }
  0x36   :  { %721 = vmatprep.mubr.bf16.mxu1 %v4611_v58 }
  0x38   :  { %3627 = vmatpush3.bf16.msra.mxu0 %v4169_v56  ;;  %v4227_v56 = vld [vmem:[%s5571_s2 + $0x248] sm:$0xff]  }
  0x39   :  { %3628 = vmatprep.subr.bf16.mxu0 %v4177_v62  ;;  %v4230_v62 = vld [vmem:[%s5571_s2 + $0x290] sm:$0xff]  }
  0x3b   :  { %657 = vmatmul.mubr.bf16.gmra.mrb[12].mxu0 %v4621_v60 }
  0x3c   :  { %722 = vmatmul.mubr.bf16.gmra.mrb[12].mxu1 %v4626_v61  ;;  %3629 = vmatpush3.bf16.msra.mxu0 %v4178_v63  ;;  %v4231_v63 = vld [vmem:[%s5571_s2 + $0x2d8] sm:$0xff]  }
  0x3d   :  { %3630 = vmatprep.subr.bf16.mxu0 %v4179_v0  ;;  %762 = vmatprep.mubr.bf16.mxu0 %v4645_v2  ;;  %v4233_v0 = vld [vmem:[%s5571_s2 + $0x310] sm:$0xff]  }
  0x3e   :  { %4044 = vmatprep.mubr.msk.bf16.mxu1 %vm587_vm0, %v4650_v3 }
  0x40   :  { %3631 = vmatpush3.bf16.msra.mxu0 %v4180_v1  ;;  %v4232_v1 = vld [vmem:[%s5571_s2 + $0x298] sm:$0xff]  }
  0x41   :  { %3662 = vmatprep.subr.bf16.mxu0 %v4187_v7  ;;  %v4241_v7 = vld [vmem:[%s5571_s2 + $0x2b8] sm:$0xff]  }
  0x43   :  { %763 = vmatmul.mubr.bf16.vlgmr.msra.gmra.mrb[16].mxu0 %v4655_v4 }
  0x44   :  { %4045 = vmatmul.mubr.msk.bf16.vlgmr.msra.gmra.mrb[16].mxu1 %vm587_vm0, %v4666_v6  ;;  %3663 = vmatpush3.bf16.msra.mxu0 %v4189_v9  ;;  %v4252_v9 = vld [vmem:[%s5571_s2 + $0x3a8] sm:$0xff]  }
  0x45   :  { %3703 = vmatpush3.bf16.msra.mxu1 %v4188_v8  ;;  %3664 = vmatprep.subr.bf16.mxu0 %v4191_v11  ;;  %v4243_v8 = vld [vmem:[%s5571_s2 + $0x300] sm:$0xff]   ;;  %v4255_v11 = vld [vmem:[%s5571_s2 + $0x3f0] sm:$0xff]  }
  0x46   :  { %3704 = vmatprep.subr.bf16.mxu1 %v4190_v10  ;;  %770 = vmatprep.mubr.bf16.mxu0 %v4695_v14  ;;  %v4254_v10 = vld [vmem:[%s5571_s2 + $0x328] sm:$0xff]  }
  0x47   :  { %4048 = vmatprep.mubr.msk.bf16.mxu1 %vm587_vm0, %v4755_v30 }
  0x48   :  { %3665 = vmatpush3.bf16.msra.mxu0 %v4193_v13  ;;  %v4259_v13 = vld [vmem:[%s5571_s2 + $0x3f8] sm:$0xff]  }
  0x49   :  { %3705 = vmatpush3.bf16.msra.mxu1 %v4192_v12  ;;  %3666 = vmatprep.subr.bf16.mxu0 %v4198_v17  ;;  %v4258_v12 = vld [vmem:[%s5571_s2 + $0x330] sm:$0xff]   ;;  %v4262_v17 = vld [vmem:[%s5571_s2 + $0x338] sm:$0xff]  }
  0x4a   :  { %3706 = vmatprep.subr.bf16.mxu1 %v4196_v15  ;;  %v4260_v15 = vld [vmem:[%s5571_s2 + $0x3b8] sm:$0xff]  }
  0x4b   :  { %771 = vmatmul.mubr.bf16.gmra.mrb[20].mxu0 %v4704_v16 }
  0x4c   :  { %3667 = vmatpush3.bf16.msra.mxu0 %v4200_v19  ;;  %778 = vmatprep.mubr.bf16.mxu0 %v4731_v24  ;;  %v4265_v19 = vld [vmem:[%s5571_s2 + $0x380] sm:$0xff]  }
  0x4d   :  { %3707 = vmatpush3.bf16.msra.mxu1 %v4199_v18  ;;  %3668 = vmatprep.subr.bf16.mxu0 %v4202_v21  ;;  %v4263_v18 = vld [vmem:[%s5571_s2 + $0x400] sm:$0xff]   ;;  %v4267_v21 = vld [vmem:[%s5571_s2 + $0x408] sm:$0xff]  }
  0x4e   :  { %3708 = vmatprep.subr.bf16.mxu1 %v4201_v20  ;;  %4049 = vmatmul.mubr.msk.bf16.gmra.mrb[20].mxu1 %vm587_vm0, %v4765_v36  ;;  %v4266_v20 = vld [vmem:[%s5571_s2 + $0x340] sm:$0xff]  }
  0x4f   :  { %1358 = vmatprep.mubr.bf16.mxu1 %v4500_v33 }
  0x50   :  { %3669 = vmatpush3.bf16.msra.mxu0 %v4204_v23  ;;  %v4270_v23 = vld [vmem:[%s5571_s2 + $0x348] sm:$0xff]  }
  0x51   :  { %3709 = vmatpush3.bf16.msra.mxu1 %v4203_v22  ;;  %3670 = vmatprep.subr.bf16.mxu0 %v4209_v27  ;;  %v4269_v22 = vld [vmem:[%s5571_s2 + $0x388] sm:$0xff]   ;;  %v4274_v27 = vld [vmem:[%s5571_s2 + $0x350] sm:$0xff]  }
  0x52   :  { %3710 = vmatprep.subr.bf16.mxu1 %v4207_v25  ;;  %v4273_v25 = vld [vmem:[%s5571_s2 + $0x390] sm:$0xff]  }
  0x53   :  { %779 = vmatmul.mubr.bf16.gmra.mrb[24].mxu0 %v4739_v26 }
  0x54   :  { %3671 = vmatpush3.bf16.msra.mxu0 %v4211_v29  ;;  %786 = vmatprep.mubr.bf16.mxu0 %v4782_v42  ;;  %v4277_v29 = vld [vmem:[%s5571_s2 + $0x398] sm:$0xff]  }
  0x55   :  { %3711 = vmatpush3.bf16.msra.mxu1 %v4210_v28  ;;  %3672 = vmatprep.subr.bf16.mxu0 %v4215_v37  ;;  %v4275_v28 = vld [vmem:[%s5571_s2 + $0x418] sm:$0xff]  }
  0x56   :  { %3712 = vmatprep.subr.bf16.mxu1 %v4213_v31  ;;  %v4276_v31 = vld [vmem:[%s5571_s2 + $0x3d8] sm:$0xff]  }
  0x57   :  { %v4278_v37 = vld [vmem:[%s5571_s2 + $0x358] sm:$0xff]  }
  0x58   :  { %3673 = vmatpush3.bf16.msra.mxu0 %v4217_v39  ;;  %v5003_v39 = vld [vmem:[%s5572_s0 + $0x4] ss:$28 sps:$4 sm:$0xff]  }
  0x59   :  { %3713 = vmatpush3.bf16.msra.mxu1 %v4216_v38  ;;  %3674 = vmatprep.subr.bf16.mxu0 %v4222_v47  ;;  %v4283_v38 = vld [vmem:[%s5571_s2 + $0x4a0] sm:$0xff]  }
  0x5a   :  { %3714 = vmatprep.subr.bf16.mxu1 %v4220_v45  ;;  %v4280_v45 = vld [vmem:[%s5571_s2 + $0x420] sm:$0xff]  }
  0x5b   :  { %787 = vmatmul.mubr.bf16.gmra.mrb[28].mxu0 %v4790_v46  ;;  %v5018_v47 = vld [vmem:[%s5572_s0 + $0x8] ss:$28 sps:$4 sm:$0xff]  }
  0x5c   :  { %1293 = vmatprep.mubr.bf16.mxu0 %v4495_v32  ;;  %3675 = vmatpush3.bf16.msra.mxu0 %v4224_v53  ;;  %v4228_v32 = vld [vmem:[%s5571_s2 + $0x1c8] sm:$0xff]   ;;  %v5027_v53 = vld [vmem:[%s5572_s0] ss:$28 sps:$4 sm:$0xff]  }
  0x5d   :  { %3715 = vmatpush3.bf16.msra.mxu1 %v4223_v48  ;;  %3676 = vmatprep.subr.bf16.mxu0 %v4226_v55  ;;  %v4292_v48 = vld [vmem:[%s5571_s2 + $0x4a8] sm:$0xff]  }
  0x5e   :  { %3716 = vmatprep.subr.bf16.mxu1 %v4225_v54  ;;  %v5033_v54 = vld [vmem:[%s5572_s0 + $0x44] ss:$28 sps:$4 sm:$0xff]   ;;  %v4282_v55 = vld [vmem:[%s5571_s2 + $0x428] sm:$0xff]  }
  0x60   :  { %3677 = vmatpush3.bf16.msra.mxu0 %v4228_v32  ;;  %v5045_v32 = vld [vmem:[%s5572_s0 + $0x3c] ss:$28 sps:$4 sm:$0xff]  }
  0x61   :  { %3717 = vmatpush3.bf16.msra.mxu1 %v4227_v56  ;;  %3742 = vmatprep.subr.bf16.mxu0 %v4229_v59  ;;  %v4284_v56 = vld [vmem:[%s5571_s2 + $0x470] sm:$0xff]  }
  0x62   :  { %4052 = vmatprep.subr.bf16.mxu1 %v4233_v0  ;;  %v4297_v59 = vld [vmem:[%s5571_s2 + $0x570] sm:$0xff]  }
  0x63   :  { %1294 = vmatmul.mubr.bf16.vlgmr.msra.gmra.mrb[32].mxu0 %v4506_v34  ;;  %v4235_v34 = vld [vmem:[%s5571_s2 + $0x2a0] sm:$0xff]  }
  0x64   :  { %1359 = vmatmul.mubr.bf16.vlgmr.msra.gmra.mrb[24].mxu1 %v4511_v35  ;;  %3743 = vmatpush3.bf16.msra.mxu0 %v4230_v62  ;;  %v4234_v35 = vld [vmem:[%s5571_s2 + $0x2e0] sm:$0xff]   ;;  %v4285_v62 = vld [vmem:[%s5571_s2 + $0x430] sm:$0xff]  }
  0x65   :  { %1366 = vmatprep.mubr.bf16.mxu1 %v4536_v41  ;;  %1301 = vmatprep.mubr.bf16.mxu0 %v4531_v40  ;;  %v4236_v41 = vld [vmem:[%s5571_s2 + $0x2e8] sm:$0xff]  }
  0x66   :  { %3744 = vmatprep.subr.bf16.mxu0 %v4231_v63  ;;  %4053 = vmatpush3.bf16.msra.mxu1 %v4233_v0  ;;  %v4237_v40 = vld [vmem:[%s5571_s2 + $0x2a8] sm:$0xff]   ;;  %v4286_v63 = vld [vmem:[%s5571_s2 + $0x478] sm:$0xff]  }
  0x67   :  { %4054 = vmatprep.subr.bf16.mxu1 %v4242_v5  ;;  %v5060_v0 = vld [vmem:[%s5572_s0 + $0x40] ss:$28 sps:$4 sm:$0xff]  }
  0x68   :  { %3745 = vmatpush3.bf16.msra.mxu0 %v4232_v1  ;;  %v5066_v1 = vld [vmem:[%s5572_s0 + $0x38] ss:$28 sps:$4 sm:$0xff]  }
  0x69   :  { %3746 = vmatprep.subr.bf16.mxu0 %v4234_v35  ;;  %v5072_v35 = vld [vmem:[%s5572_s0 + $0x7c] ss:$28 sps:$4 sm:$0xff]  }
  0x6a   :  { %4055 = vmatpush3.bf16.msra.mxu1 %v4242_v5  ;;  %v4289_v5 = vld [vmem:[%s5571_s2 + $0x440] sm:$0xff]  }
  0x6b   :  { %1302 = vmatmul.mubr.bf16.gmra.mrb[36].mxu0 %v4545_v43  ;;  %v4239_v43 = vld [vmem:[%s5571_s2 + $0x2b0] sm:$0xff]  }
  0x6c   :  { %1367 = vmatmul.mubr.bf16.gmra.mrb[28].mxu1 %v4551_v44  ;;  %3747 = vmatpush3.bf16.msra.mxu0 %v4235_v34  ;;  %v4238_v44 = vld [vmem:[%s5571_s2 + $0x2f0] sm:$0xff]   ;;  %v4287_v34 = vld [vmem:[%s5571_s2 + $0x438] sm:$0xff]  }
  0x6d   :  { %1374 = vmatprep.mubr.bf16.mxu1 %v4575_v50  ;;  %1309 = vmatprep.mubr.bf16.mxu0 %v4570_v49  ;;  %v4240_v49 = vld [vmem:[%s5571_s2 + $0x2f8] sm:$0xff]   ;;  %v4247_v50 = vld [vmem:[%s5571_s2 + $0x3e0] sm:$0xff]  }
  0x6e   :  { %3748 = vmatprep.subr.bf16.mxu0 %v4236_v41  ;;  %3828 = vmatprep.subr.bf16.mxu1 %v4247_v50  ;;  %v5081_v41 = vld [vmem:[%s5572_s0 + $0x74] ss:$28 sps:$4 sm:$0xff]  }
  0x6f   :  { %v5108_v50 = vld [vmem:[%s5572_s0 + $0xb4] ss:$28 sps:$4 sm:$0xff]  }
  0x70   :  { %3749 = vmatpush3.bf16.msra.mxu0 %v4237_v40  ;;  %v4288_v40 = vld [vmem:[%s5571_s2 + $0x480] sm:$0xff]  }
  0x71   :  { %3750 = vmatprep.subr.bf16.mxu0 %v4238_v44  ;;  %v4290_v44 = vld [vmem:[%s5571_s2 + $0x488] sm:$0xff]  }
  0x73   :  { %1310 = vmatmul.mubr.bf16.gmra.mrb[40].mxu0 %v4580_v51  ;;  %v4244_v51 = vld [vmem:[%s5571_s2 + $0x2c0] sm:$0xff]  }
  0x74   :  { %1375 = vmatmul.mubr.bf16.gmra.mrb[32].mxu1 %v4585_v52  ;;  %3751 = vmatpush3.bf16.msra.mxu0 %v4239_v43  ;;  %v4245_v52 = vld [vmem:[%s5571_s2 + $0x308] sm:$0xff]   ;;  %v5096_v43 = vld [vmem:[%s5572_s0 + $0x78] ss:$28 sps:$4 sm:$0xff]  }
  0x75   :  { %1382 = vmatprep.mubr.bf16.mxu1 %v4611_v58  ;;  %1317 = vmatprep.mubr.bf16.mxu0 %v4606_v57  ;;  %v4246_v57 = vld [vmem:[%s5571_s2 + $0x2c8] sm:$0xff]   ;;  %v4249_v58 = vld [vmem:[%s5571_s2 + $0x360] sm:$0xff]  }
  0x76   :  { %3752 = vmatprep.subr.bf16.mxu0 %v4240_v49  ;;  %v5102_v49 = vld [vmem:[%s5572_s0 + $0x70] ss:$28 sps:$4 sm:$0xff]  }
  0x78   :  { %3753 = vmatpush3.bf16.msra.mxu0 %v4241_v7  ;;  %v4291_v7 = vld [vmem:[%s5571_s2 + $0x448] sm:$0xff]  }
  0x79   :  { %3754 = vmatprep.subr.bf16.mxu0 %v4243_v8  ;;  %v5117_v8 = vld [vmem:[%s5572_s0 + $0xac] ss:$28 sps:$4 sm:$0xff]  }
  0x7b   :  { %1318 = vmatmul.mubr.bf16.gmra.mrb[44].mxu0 %v4621_v60  ;;  %v4250_v60 = vld [vmem:[%s5571_s2 + $0x320] sm:$0xff]  }
  0x7c   :  { %1383 = vmatmul.mubr.bf16.gmra.mrb[36].mxu1 %v4626_v61  ;;  %3755 = vmatpush3.bf16.msra.mxu0 %v4244_v51  ;;  %v4248_v61 = vld [vmem:[%s5571_s2 + $0x3a0] sm:$0xff]   ;;  %v4293_v51 = vld [vmem:[%s5571_s2 + $0x490] sm:$0xff]  }
  0x7d   :  { %4056 = vmatprep.mubr.msk.bf16.mxu1 %vm587_vm0, %v4650_v3  ;;  %1423 = vmatprep.mubr.bf16.mxu0 %v4645_v2  ;;  %v4251_v3 = vld [vmem:[%s5571_s2 + $0x3e8] sm:$0xff]  }
  0x7e   :  { %3756 = vmatprep.subr.bf16.mxu0 %v4245_v52  ;;  %v4253_v2 = vld [vmem:[%s5571_s2 + $0x368] sm:$0xff]   ;;  %v4294_v52 = vld [vmem:[%s5571_s2 + $0x450] sm:$0xff]  }
  0x80   :  { %3757 = vmatpush3.bf16.msra.mxu0 %v4246_v57  ;;  %v4295_v57 = vld [vmem:[%s5571_s2 + $0x498] sm:$0xff]  }
  0x81   :  { %3788 = vmatprep.subr.bf16.mxu0 %v4249_v58  ;;  %v5132_v58 = vld [vmem:[%s5572_s0 + $0xb0] ss:$28 sps:$4 sm:$0xff]  }
  0x83   :  { %1424 = vmatmul.mubr.bf16.vlgmr.msra.gmra.mrb[48].mxu0 %v4655_v4  ;;  %v4256_v4 = vld [vmem:[%s5571_s2 + $0x3b0] sm:$0xff]  }
  0x84   :  { %4057 = vmatmul.mubr.msk.bf16.vlgmr.msra.gmra.mrb[40].mxu1 %vm587_vm0, %v4666_v6  ;;  %3789 = vmatpush3.bf16.msra.mxu0 %v4250_v60  ;;  %v4257_v6 = vld [vmem:[%s5571_s2 + $0x370] sm:$0xff]  }
  0x85   :  { %3829 = vmatpush3.bf16.msra.mxu1 %v4248_v61  ;;  %3790 = vmatprep.subr.bf16.mxu0 %v4253_v2  ;;  %v5138_v61 = vld [vmem:[%s5572_s0 + $0xa8] ss:$28 sps:$4 sm:$0xff]   ;;  %v5144_v60 = vld [vmem:[%s5572_s0 + $0x18] ss:$28 sps:$4 sm:$0xff]  }
  0x86   :  { %3830 = vmatprep.subr.bf16.mxu1 %v4251_v3  ;;  %1431 = vmatprep.mubr.bf16.mxu0 %v4695_v14  ;;  %v4261_v14 = vld [vmem:[%s5571_s2 + $0x378] sm:$0xff]   ;;  %v5154_v2 = vld [vmem:[%s5572_s0 + $0x14] ss:$28 sps:$4 sm:$0xff]  }
  0x87   :  { %4060 = vmatprep.mubr.msk.bf16.mxu1 %vm587_vm0, %v4755_v30  ;;  %v4296_v3 = vld [vmem:[%s5571_s2 + $0x458] sm:$0xff]  }
  0x88   :  { %3791 = vmatpush3.bf16.msra.mxu0 %v4254_v10  ;;  %v4298_v10 = vld [vmem:[%s5571_s2 + $0x530] sm:$0xff]  }
  0x89   :  { %3831 = vmatpush3.bf16.msra.mxu1 %v4252_v9  ;;  %3792 = vmatprep.subr.bf16.mxu0 %v4257_v6  ;;  %v4299_v9 = vld [vmem:[%s5571_s2 + $0x4f0] sm:$0xff]   ;;  %v4301_v6 = vld [vmem:[%s5571_s2 + $0x578] sm:$0xff]  }
  0x8a   :  { %3832 = vmatprep.subr.bf16.mxu1 %v4255_v11  ;;  %v4300_v11 = vld [vmem:[%s5571_s2 + $0x4b0] sm:$0xff]  }
  0x8b   :  { %1432 = vmatmul.mubr.bf16.gmra.mrb[52].mxu0 %v4704_v16  ;;  %v4264_v16 = vld [vmem:[%s5571_s2 + $0x3c0] sm:$0xff]  }
  0x8c   :  { %4061 = vmatmul.mubr.msk.bf16.gmra.mrb[44].mxu1 %vm587_vm0, %v4765_v36  ;;  %3793 = vmatpush3.bf16.msra.mxu0 %v4258_v12  ;;  %v5175_v12 = vld [vmem:[%s5572_s0 + $0x50] ss:$28 sps:$4 sm:$0xff]  }
  0x8d   :  { %3833 = vmatpush3.bf16.msra.mxu1 %v4256_v4  ;;  %3794 = vmatprep.subr.bf16.mxu0 %v4261_v14  ;;  %v4303_v4 = vld [vmem:[%s5571_s2 + $0x4f8] sm:$0xff]   ;;  %v5185_v14 = vld [vmem:[%s5572_s0 + $0x10] ss:$28 sps:$4 sm:$0xff]  }
  0x8e   :  { %3834 = vmatprep.subr.bf16.mxu1 %v4259_v13  ;;  %1439 = vmatprep.mubr.bf16.mxu0 %v4731_v24  ;;  %v4271_v24 = vld [vmem:[%s5571_s2 + $0x410] sm:$0xff]   ;;  %v4302_v13 = vld [vmem:[%s5571_s2 + $0x538] sm:$0xff]  }
  0x8f   :  { %2027 = vmatprep.mubr.bf16.mxu1 %v4500_v33  ;;  %v4268_v33 = vld [vmem:[%s5571_s2 + $0x3c8] sm:$0xff]  }
  0x90   :  { %3795 = vmatpush3.bf16.msra.mxu0 %v4262_v17  ;;  %v4305_v17 = vld [vmem:[%s5571_s2 + $0x580] sm:$0xff]  }
  0x91   :  { %3835 = vmatpush3.bf16.msra.mxu1 %v4260_v15  ;;  %3796 = vmatprep.subr.bf16.mxu0 %v4265_v19  ;;  %v4304_v15 = vld [vmem:[%s5571_s2 + $0x4b8] sm:$0xff]   ;;  %v4307_v19 = vld [vmem:[%s5571_s2 + $0x500] sm:$0xff]  }
  0x92   :  { %3836 = vmatprep.subr.bf16.mxu1 %v4263_v18  ;;  %v5197_v18 = vld [vmem:[%s5572_s0 + $0x4c] ss:$28 sps:$4 sm:$0xff]  }
  0x93   :  { %1440 = vmatmul.mubr.bf16.gmra.mrb[56].mxu0 %v4739_v26  ;;  %v4272_v26 = vld [vmem:[%s5571_s2 + $0x3d0] sm:$0xff]  }
  0x94   :  { %3797 = vmatpush3.bf16.msra.mxu0 %v4266_v20  ;;  %1447 = vmatprep.mubr.bf16.mxu0 %v4782_v42  ;;  %v4279_v42 = vld [vmem:[%s5571_s2 + $0x460] sm:$0xff]  }
  0x95   :  { %3837 = vmatpush3.bf16.msra.mxu1 %v4264_v16  ;;  %3798 = vmatprep.subr.bf16.mxu0 %v4269_v22  ;;  %v4306_v16 = vld [vmem:[%s5571_s2 + $0x540] sm:$0xff]   ;;  %v4311_v22 = vld [vmem:[%s5571_s2 + $0x508] sm:$0xff]  }
  0x96   :  { %3838 = vmatprep.subr.bf16.mxu1 %v4267_v21  ;;  %v4308_v20 = vld [vmem:[%s5571_s2 + $0x4c0] sm:$0xff]   ;;  %v4309_v21 = vld [vmem:[%s5571_s2 + $0x588] sm:$0xff]  }
  0x98   :  { %3799 = vmatpush3.bf16.msra.mxu0 %v4270_v23  ;;  %v4312_v23 = vld [vmem:[%s5571_s2 + $0x4c8] sm:$0xff]  }
  0x99   :  { %3839 = vmatpush3.bf16.msra.mxu1 %v4268_v33  ;;  %3800 = vmatprep.subr.bf16.mxu0 %v4273_v25  ;;  %v5225_v33 = vld [vmem:[%s5572_s0 + $0x48] ss:$28 sps:$4 sm:$0xff]   ;;  %v4315_v25 = vld [vmem:[%s5571_s2 + $0x510] sm:$0xff]  }
  0x9a   :  { %3840 = vmatprep.subr.bf16.mxu1 %v4271_v24  ;;  %v4313_v24 = vld [vmem:[%s5571_s2 + $0x590] sm:$0xff]  }
  0x9b   :  { %1448 = vmatmul.mubr.bf16.gmra.mrb[60].mxu0 %v4790_v46  ;;  %v4281_v46 = vld [vmem:[%s5571_s2 + $0x468] sm:$0xff]  }
  0x9c   :  { %3801 = vmatpush3.bf16.msra.mxu0 %v4274_v27  ;;  %1962 = vmatprep.mubr.bf16.mxu0 %v5003_v39  ;;  %v4369_v27 = vld [vmem:[%s5572_s0 + $0xc] ss:$28 sps:$4 sm:$0xff]  }
  0x9d   :  { %3841 = vmatpush3.bf16.msra.mxu1 %v4272_v26  ;;  %3802 = vmatprep.subr.bf16.mxu0 %v4277_v29  ;;  %v4314_v26 = vld [vmem:[%s5571_s2 + $0x550] sm:$0xff]   ;;  %v4317_v29 = vld [vmem:[%s5571_s2 + $0x598] sm:$0xff]  }
  0x9e   :  { %3842 = vmatprep.subr.bf16.mxu1 %v4275_v28  ;;  %v4316_v28 = vld [vmem:[%s5571_s2 + $0x4d0] sm:$0xff]  }
  0xa0   :  { %3803 = vmatpush3.bf16.msra.mxu0 %v4278_v37  ;;  %v4318_v37 = vld [vmem:[%s5571_s2 + $0x558] sm:$0xff]  }
  0xa1   :  { %3843 = vmatpush3.bf16.msra.mxu1 %v4276_v31  ;;  %3868 = vmatprep.subr.bf16.mxu0 %v4279_v42  ;;  %v4319_v31 = vld [vmem:[%s5571_s2 + $0x518] sm:$0xff]  }
  0xa2   :  { %4064 = vmatprep.subr.bf16.mxu1 %v4283_v38  ;;  %v4320_v42 = vld [vmem:[%s5571_s2 + $0x4d8] sm:$0xff]  }
  0xa3   :  { %1963 = vmatmul.mubr.bf16.vlgmr.msra.gmra.mrb[64].mxu0 %v5027_v53 }
  0xa4   :  { %2028 = vmatmul.mubr.bf16.vlgmr.msra.gmra.mrb[48].mxu1 %v5018_v47  ;;  %3869 = vmatpush3.bf16.msra.mxu0 %v4280_v45  ;;  %v4321_v45 = vld [vmem:[%s5571_s2 + $0x5a0] sm:$0xff]  }
  0xa5   :  { %2035 = vmatprep.mubr.bf16.mxu1 %v5033_v54  ;;  %4065 = vmatpush3.bf16.msra.mxu1 %v4283_v38  ;;  %v5264_v38 = vld [vmem:[%s5572_s0 + $0x80] ss:$28 sps:$4 sm:$0xff]  }
  0xa6   :  { %3870 = vmatprep.subr.bf16.mxu0 %v4281_v46  ;;  %1970 = vmatprep.mubr.bf16.mxu0 %v5045_v32  ;;  %v5276_v46 = vld [vmem:[%s5572_s0 + $0xbc] ss:$28 sps:$4 sm:$0xff]  }
  0xa7   :  { %4066 = vmatprep.subr.bf16.mxu1 %v4292_v48 }
  0xa8   :  { %3871 = vmatpush3.bf16.msra.mxu0 %v4282_v55  ;;  %v4322_v55 = vld [vmem:[%s5571_s2 + $0x560] sm:$0xff]  }
  0xa9   :  { %4067 = vmatpush3.bf16.msra.mxu1 %v4292_v48  ;;  %3872 = vmatprep.subr.bf16.mxu0 %v4284_v56  ;;  %v4323_v48 = vld [vmem:[%s5571_s2 + $0x520] sm:$0xff]  }
  0xaa   :  { %3954 = vmatprep.subr.bf16.mxu1 %v4297_v59  ;;  %v4324_v56 = vld [vmem:[%s5571_s2 + $0x4e0] sm:$0xff]   ;;  %v4325_v59 = vld [vmem:[%s5571_s2 + $0x5a8] sm:$0xff]  }
  0xab   :  { %1971 = vmatmul.mubr.bf16.gmra.mrb[68].mxu0 %v5066_v1 }
  0xac   :  { %2036 = vmatmul.mubr.bf16.gmra.mrb[52].mxu1 %v5060_v0  ;;  %3873 = vmatpush3.bf16.msra.mxu0 %v4285_v62  ;;  %v4327_v62 = vld [vmem:[%s5571_s2 + $0x528] sm:$0xff]  }
  0xad   :  { %2043 = vmatprep.mubr.bf16.mxu1 %v5072_v35  ;;  %1978 = vmatprep.mubr.bf16.mxu0 %v5081_v41 }
  0xae   :  { %3874 = vmatprep.subr.bf16.mxu0 %v4286_v63  ;;  %v5297_v63 = vld [vmem:[%s5572_s0 + $0xb8] ss:$28 sps:$4 sm:$0xff]  }
  0xb0   :  { %3875 = vmatpush3.bf16.msra.mxu0 %v4287_v34  ;;  %v4326_v34 = vld [vmem:[%s5571_s2 + $0x568] sm:$0xff]  }
  0xb1   :  { %3876 = vmatprep.subr.bf16.mxu0 %v4288_v40  ;;  %v4328_v40 = vld [vmem:[%s5571_s2 + $0x4e8] sm:$0xff]  }
  0xb3   :  { %1979 = vmatmul.mubr.bf16.gmra.mrb[72].mxu0 %v5102_v49 }
  0xb4   :  { %2044 = vmatmul.mubr.bf16.gmra.mrb[56].mxu1 %v5096_v43  ;;  %3877 = vmatpush3.bf16.msra.mxu0 %v4289_v5  ;;  %v4329_v5 = vld [vmem:[%s5571_s2 + $0x5f0] sm:$0xff]  }
  0xb5   :  { %2051 = vmatprep.mubr.bf16.mxu1 %v5108_v50  ;;  %1986 = vmatprep.mubr.bf16.mxu0 %v5117_v8 }
  0xb6   :  { %3878 = vmatprep.subr.bf16.mxu0 %v4290_v44  ;;  %v2869_v44 = vld [vmem:[%s5573_s1 + $0x10] sm:$0xff] }
  0xb8   :  { %3879 = vmatpush3.bf16.msra.mxu0 %v4291_v7  ;;  %v4375_v7 = vmov 0  }
  0xb9   :  { %3880 = vmatprep.subr.bf16.mxu0 %v4293_v51  ;;  %4106 = vset.pattern.permute.xlu1 %v4375_v7  ;;  %v2867_v51 = vld [vmem:[%s5573_s1] sm:$0xff] }
  0xba   :  { %4105 = vset.pattern.permute.xlu0 %v4375_v7  ;;  %2887 = vperm.xlu1 %4106, %v2869_v44  }
  0xbb   :  { %1987 = vmatmul.mubr.bf16.gmra.mrb[76].mxu0 %v5138_v61  ;;  %2877 = vperm.xlu0 %4105, %v2867_v51  }
  0xbc   :  { %2052 = vmatmul.mubr.bf16.gmra.mrb[60].mxu1 %v5132_v58  ;;  %3881 = vmatpush3.bf16.msra.mxu0 %v4294_v52  ;;  %v4330_v52 = vld [vmem:[%s5571_s2 + $0x5b0] sm:$0xff]  }
  0xbd   :  { %4068 = vmatprep.mubr.msk.bf16.mxu1 %vm587_vm0, %v5144_v60  ;;  %2092 = vmatprep.mubr.bf16.mxu0 %v5154_v2 }
  0xbe   :  { %3882 = vmatprep.subr.bf16.mxu0 %v4295_v57  ;;  %v4331_v57 = vld [vmem:[%s5571_s2 + $0x5f8] sm:$0xff]  }
  0xc0   :  { %3883 = vmatpush3.bf16.msra.mxu0 %v4296_v3  ;;  %v2870_v3 = vld [vmem:[%s5573_s1 + $0x18] sm:$0xff] }
  0xc1   :  { %3914 = vmatprep.subr.bf16.mxu0 %v4299_v9  ;;  %v4333_v9 = vld [vmem:[%s5571_s2 + $0x600] sm:$0xff]   ;;  %2892 = vperm.xlu1 %4106, %v2870_v3  }
  0xc3   :  { %2093 = vmatmul.mubr.bf16.vlgmr.msra.gmra.mrb[80].mxu0 %v5185_v14 }
  0xc4   :  { %4069 = vmatmul.mubr.msk.bf16.vlgmr.msra.gmra.mrb[64].mxu1 %vm587_vm0, %v5175_v12  ;;  %3915 = vmatpush3.bf16.msra.mxu0 %v4300_v11  ;;  %v2871_v11 = vld [vmem:[%s5573_s1 + $0x20] sm:$0xff] }
  0xc5   :  { %3955 = vmatpush3.bf16.msra.mxu1 %v4298_v10  ;;  %3916 = vmatprep.subr.bf16.mxu0 %v4303_v4  ;;  %v2872_v10 = vld [vmem:[%s5573_s1 + $0x28] sm:$0xff]  ;;  %v2873_v4 = vld [vmem:[%s5573_s1 + $0x30] sm:$0xff] }
  0xc6   :  { %3956 = vmatprep.subr.bf16.mxu1 %v4301_v6  ;;  %2100 = vmatprep.mubr.bf16.mxu0 %v5197_v18  ;;  %v4337_v6 = vld [vmem:[%s5571_s2 + $0x610] sm:$0xff]  }
  0xc7   :  { %4072 = vmatprep.mubr.msk.bf16.mxu1 %vm587_vm0, %v4755_v30  ;;  %v4310_v30 = vld [vmem:[%s5571_s2 + $0x548] sm:$0xff]   ;;  %2902 = vperm.xlu1 %4106, %v2872_v10  }
  0xc8   :  { %3917 = vmatpush3.bf16.msra.mxu0 %v4304_v15 }
  0xc9   :  { %3957 = vmatpush3.bf16.msra.mxu1 %v4302_v13  ;;  %3918 = vmatprep.subr.bf16.mxu0 %v4307_v19 }
  0xca   :  { %3958 = vmatprep.subr.bf16.mxu1 %v4305_v17 }
  0xcb   :  { %2101 = vmatmul.mubr.bf16.gmra.mrb[84].mxu0 %v5225_v33 }
  0xcc   :  { %4073 = vmatmul.mubr.msk.bf16.gmra.mrb[68].mxu1 %vm587_vm0, %v4765_v36  ;;  %3919 = vmatpush3.bf16.msra.mxu0 %v4308_v20  ;;  %v5237_v36 = vld [vmem:[%s5572_s0 + $0x84] ss:$28 sps:$4 sm:$0xff]  }
  0xcd   :  { %3959 = vmatpush3.bf16.msra.mxu1 %v4306_v16  ;;  %3920 = vmatprep.subr.bf16.mxu0 %v4311_v22  ;;  %v4340_v22 = vld [vmem:[%s5571_s2 + $0x5d8] sm:$0xff]  }
  0xce   :  { %3960 = vmatprep.subr.bf16.mxu1 %v4309_v21  ;;  %2108 = vmatprep.mubr.bf16.mxu0 %v5237_v36 }
  0xcf   :  { %2696 = vmatprep.mubr.bf16.mxu1 %v4369_v27  ;;  %v4342_v27 = vld [vmem:[%s5571_s2 + $0x5e0] sm:$0xff]  }
  0xd0   :  { %3921 = vmatpush3.bf16.msra.mxu0 %v4312_v23 }
  0xd1   :  { %3961 = vmatpush3.bf16.msra.mxu1 %v4310_v30  ;;  %3922 = vmatprep.subr.bf16.mxu0 %v4315_v25 }
  0xd2   :  { %3962 = vmatprep.subr.bf16.mxu1 %v4313_v24 }
  0xd3   :  { %2109 = vmatmul.mubr.bf16.gmra.mrb[88].mxu0 %v5264_v38 }
  0xd4   :  { %3923 = vmatpush3.bf16.msra.mxu0 %v4316_v28  ;;  %2116 = vmatprep.mubr.bf16.mxu0 %v5276_v46  ;;  %v4343_v28 = vld [vmem:[%s5571_s2 + $0x628] sm:$0xff]  }
  0xd5   :  { %3963 = vmatpush3.bf16.msra.mxu1 %v4314_v26  ;;  %3924 = vmatprep.subr.bf16.mxu0 %v4319_v31 }
  0xd6   :  { %3964 = vmatprep.subr.bf16.mxu1 %v4317_v29 }
  0xd8   :  { %3925 = vmatpush3.bf16.msra.mxu0 %v4320_v42 }
  0xd9   :  { %3965 = vmatpush3.bf16.msra.mxu1 %v4318_v37  ;;  %3926 = vmatprep.subr.bf16.mxu0 %v4323_v48 }
  0xda   :  { %3966 = vmatprep.subr.bf16.mxu1 %v4321_v45 }
  0xdb   :  { %2117 = vmatmul.mubr.bf16.gmra.mrb[92].mxu0 %v5297_v63 }
  0xdc   :  { %3927 = vmatpush3.bf16.msra.mxu0 %v4324_v56  ;;  %2631 = vmatprep.mubr.bf16.mxu0 %v5003_v39  ;;  %v4332_v39 = vld [vmem:[%s5571_s2 + $0x5b8] sm:$0xff]  }
  0xdd   :  { %3967 = vmatpush3.bf16.msra.mxu1 %v4322_v55  ;;  %3928 = vmatprep.subr.bf16.mxu0 %v4327_v62  ;;  %v4344_v55 = vld [vmem:[%s5571_s2 + $0x5e8] sm:$0xff]  }
  0xde   :  { %3968 = vmatprep.subr.bf16.mxu1 %v4325_v59 }
  0xe0   :  { %3929 = vmatpush3.bf16.msra.mxu0 %v4328_v40 }
  0xe1   :  { %3969 = vmatpush3.bf16.msra.mxu1 %v4326_v34  ;;  %3994 = vmatprep.subr.bf16.mxu0 %v4329_v5 }
  0xe2   :  { %4088 = vmatprep.subr.bf16.mxu1 %v4329_v5  ;;  %v4346_v5 = vld [vmem:[%s5571_s2 + $0x638] sm:$0xff]  }
  0xe3   :  { %2632 = vmatmul.mubr.bf16.vlgmr.msra.gmra.mrb[96].mxu0 %v5027_v53  ;;  %v4334_v53 = vld [vmem:[%s5571_s2 + $0x5c0] sm:$0xff]  }
  0xe4   :  { %2697 = vmatmul.mubr.bf16.vlgmr.msra.gmra.mrb[72].mxu1 %v5018_v47  ;;  %3995 = vmatpush3.bf16.msra.mxu0 %v4330_v52  ;;  %v2868_v47 = vld [vmem:[%s5573_s1 + $0x8] sm:$0xff] }
  0xe5   :  { %4096 = vmatpush3.bf16.msra.mxu1 %v4330_v52  ;;  %2704 = vmatprep.mubr.bf16.mxu1 %v5033_v54  ;;  %v4335_v54 = vld [vmem:[%s5571_s2 + $0x608] sm:$0xff]  }
  0xe6   :  { %4089 = vmatprep.subr.bf16.mxu1 %v4331_v57  ;;  %3996 = vmatprep.subr.bf16.mxu0 %v4331_v57 }
  0xe7   :  { %2639 = vmatprep.mubr.bf16.mxu0 %v5045_v32  ;;  %2882 = vperm.xlu0 %4105, %v2868_v47   ;;  %v4336_v32 = vld [vmem:[%s5571_s2 + $0x5c8] sm:$0xff]  }
  0xe8   :  { %3997 = vmatpush3.bf16.msra.mxu0 %v4332_v39 }
  0xe9   :  { %4097 = vmatpush3.bf16.msra.mxu1 %v4332_v39  ;;  %3998 = vmatprep.subr.bf16.mxu0 %v4333_v9 }
  0xea   :  { %4090 = vmatprep.subr.bf16.mxu1 %v4333_v9 }
  0xeb   :  { %2640 = vmatmul.mubr.bf16.gmra.mrb[100].mxu0 %v5066_v1  ;;  %2897 = vperm.xlu0 %4105, %v2871_v11   ;;  %v4338_v1 = vld [vmem:[%s5571_s2 + $0x5d0] sm:$0xff]  }
  0xec   :  { %2705 = vmatmul.mubr.bf16.gmra.mrb[76].mxu1 %v5060_v0  ;;  %3999 = vmatpush3.bf16.msra.mxu0 %v4334_v53  ;;  %v2874_v0 = vld [vmem:[%s5573_s1 + $0x38] sm:$0xff] }
  0xed   :  { %4098 = vmatpush3.bf16.msra.mxu1 %v4334_v53  ;;  %2712 = vmatprep.mubr.bf16.mxu1 %v5072_v35  ;;  %v4339_v35 = vld [vmem:[%s5571_s2 + $0x618] sm:$0xff]  }
  0xee   :  { %4091 = vmatprep.subr.bf16.mxu1 %v4335_v54  ;;  %4000 = vmatprep.subr.bf16.mxu0 %v4335_v54 }
  0xef   :  { %2647 = vmatprep.mubr.bf16.mxu0 %v5081_v41  ;;  %2912 = vperm.xlu1 %4106, %v2874_v0  }
  0xf0   :  { %4001 = vmatpush3.bf16.msra.mxu0 %v4336_v32  ;;  %2907 = vperm.xlu0 %4105, %v2873_v4  }
  0xf1   :  { %4099 = vmatpush3.bf16.msra.mxu1 %v4336_v32  ;;  %4002 = vmatprep.subr.bf16.mxu0 %v4337_v6 }
  0xf2   :  { %4092 = vmatprep.subr.bf16.mxu1 %v4337_v6 }
  0xf3   :  { %2648 = vmatmul.mubr.bf16.gmra.mrb[104].mxu0 %v5102_v49 }
  0xf4   :  { %2713 = vmatmul.mubr.bf16.gmra.mrb[80].mxu1 %v5096_v43  ;;  %4003 = vmatpush3.bf16.msra.mxu0 %v4338_v1  ;;  %v4341_v43 = vld [vmem:[%s5571_s2 + $0x620] sm:$0xff]  }
  0xf5   :  { %4100 = vmatpush3.bf16.msra.mxu1 %v4338_v1  ;;  %2720 = vmatprep.mubr.bf16.mxu1 %v5108_v50 }
  0xf6   :  { %v3552_v13 = vpop.f32.mrb[0].mxu0  ;;  %4093 = vmatprep.subr.bf16.mxu1 %v4339_v35  ;;  %4004 = vmatprep.subr.bf16.mxu0 %v4339_v35 }
  0xf7   :  { %v3592_v15 = vpop.f32.mrb[0].mxu1  ;;  %v3553_v41 = vpop.f32.mrb[1].mxu0  ;;  %2655 = vmatprep.mubr.bf16.mxu0 %v5117_v8 }
  0xf8   :  { %v3593_v17 = vpop.f32.mrb[1].mxu1  ;;  %v3554_v19 = vadd.f32 %v3553_v41, %v3552_v13  ;;  %v3555_v20 = vpop.f32.mrb[2].mxu0  ;;  %4005 = vmatpush3.bf16.msra.mxu0 %v4340_v22 }
  0xf9   :  { %v3594_v16 = vadd.f32 %v3593_v17, %v3592_v15  ;;  %v3595_v21 = vpop.f32.mrb[2].mxu1  ;;  %v3556_v30 = vpop.f32.mrb[3].mxu0  ;;  %4101 = vmatpush3.bf16.msra.mxu1 %v4340_v22  ;;  %4006 = vmatprep.subr.bf16.mxu0 %v4341_v43 }
  0xfa   :  { %v3596_v23 = vpop.f32.mrb[3].mxu1  ;;  %v3557_v25 = vadd.f32 %v3556_v30, %v3555_v20  ;;  %4094 = vmatprep.subr.bf16.mxu1 %v4341_v43 }
  0xfb   :  { %v5377_v24 = vadd.f32 %v3594_v16, %v3554_v19  ;;  %v3597_v26 = vadd.f32 %v3596_v23, %v3595_v21  ;;  %2656 = vmatmul.mubr.bf16.gmra.mrb[108].mxu0 %v5138_v61 }
  0xfc   :  { %2721 = vmatmul.mubr.bf16.gmra.mrb[84].mxu1 %v5132_v58  ;;  %4007 = vmatpush3.bf16.msra.mxu0 %v4342_v27  ;;  %v4345_v58 = vld [vmem:[%s5571_s2 + $0x630] sm:$0xff]  }
  0xfd   :  { %v5383_v49 = vadd.f32 %v3597_v26, %v3557_v25  ;;  %4102 = vmatpush3.bf16.msra.mxu1 %v4342_v27  ;;  %4008 = vmatprep.subr.bf16.mxu0 %v4343_v28 }
  0xfe   :  { %v3558_v29 = vpop.f32.mrb[4].mxu0  ;;  %4095 = vmatprep.subr.bf16.mxu1 %v4343_v28  ;;  %2785 = vmatprep.mubr.bf16.mxu1 %v5276_v46 }
  0xff   :  { %v3598_v31 = vpop.f32.mrb[4].mxu1  ;;  %v3559_v50 = vpop.f32.mrb[5].mxu0  ;;  %2761 = vmatprep.mubr.bf16.mxu0 %v5154_v2 }
 0x100   :  { %v3599_v37 = vpop.f32.mrb[5].mxu1  ;;  %v3560_v42 = vadd.f32 %v3559_v50, %v3558_v29  ;;  %v3561_v45 = vpop.f32.mrb[6].mxu0  ;;  %4009 = vmatpush3.bf16.msra.mxu0 %v4344_v55 }
 0x101   :  { %v3600_v8 = vadd.f32 %v3599_v37, %v3598_v31  ;;  %v3601_v48 = vpop.f32.mrb[6].mxu1  ;;  %v3562_v56 = vpop.f32.mrb[7].mxu0  ;;  %4103 = vmatpush3.bf16.msra.mxu1 %v4344_v55 }
 0x102   :  { %v3602_v59 = vpop.f32.mrb[7].mxu1  ;;  %v3563_v34 = vadd.f32 %v3562_v56, %v3561_v45  ;;  %4076 = vmatprep.subr.bf16.mxu1 %v4345_v58 }
 0x103   :  { %v5397_v62 = vadd.f32 %v3600_v8, %v3560_v42  ;;  %v3603_v40 = vadd.f32 %v3602_v59, %v3601_v48  ;;  %2762 = vmatmul.mubr.bf16.vlgmr.msra.gmra.mrb[112].mxu0 %v5185_v14 }
 0x104   :  { %2786 = vmatmul.mubr.bf16.vlgmr.msra.gmra.mrb[88].mxu1 %v5297_v63  ;;  %2769 = vmatprep.mubr.bf16.mxu0 %v5197_v18 }
 0x105   :  { %v5403_v61 = vadd.f32 %v3603_v40, %v3563_v34  ;;  %4077 = vmatpush3.bf16.msra.mxu1 %v4345_v58  ;;  %4080 = vmatprep.mubr.msk.bf16.mxu1 %vm587_vm0, %v5144_v60  ;;  %v4373_v60 = vld [vmem:[%s5572_s0 + $0x88] ss:$28 sps:$4 sm:$0xff]  }
 0x106   :  { %v3564_v44 = vpop.f32.mrb[8].mxu0  ;;  %4078 = vmatprep.subr.bf16.mxu1 %v4346_v5 }
 0x107   :  { %v3604_v7 = vpop.f32.mrb[8].mxu1  ;;  %v3565_v51 = vpop.f32.mrb[9].mxu0 }
 0x108   :  { %v3605_v52 = vpop.f32.mrb[9].mxu1  ;;  %v3566_v57 = vadd.f32 %v3565_v51, %v3564_v44  ;;  %v3567_v46 = vpop.f32.mrb[10].mxu0 }
 0x109   :  { %v3606_v39 = vadd.f32 %v3605_v52, %v3604_v7  ;;  %v3607_v3 = vpop.f32.mrb[10].mxu1  ;;  %v3568_v2 = vpop.f32.mrb[11].mxu0  ;;  %4079 = vmatpush3.bf16.msra.mxu1 %v4346_v5 }
 0x10a   :  { %v3608_v9 = vpop.f32.mrb[11].mxu1  ;;  %v3569_v53 = vadd.f32 %v3568_v2, %v3567_v46 }
 0x10b   :  { %v716_v47 = vadd.f32 %v3606_v39, %v3566_v57  ;;  %v3609_v10 = vadd.f32 %v3608_v9, %v3607_v3  ;;  %2770 = vmatmul.mubr.bf16.gmra.mrb[116].mxu0 %v5225_v33  ;;  %v4374_v33 = vld [vmem:[%s5572_s0 + $0xc0] ss:$28 sps:$4 sm:$0xff]  }
 0x10c   :  { %4081 = vmatmul.mubr.msk.bf16.vlgmr.msra.gmra.mrb[92].mxu1 %vm587_vm0, %v5175_v12  ;;  %2777 = vmatprep.mubr.bf16.mxu0 %v5237_v36 }
 0x10d   :  { %v719_v54 = vadd.f32 %v3609_v10, %v3569_v53  ;;  %4084 = vmatprep.mubr.msk.bf16.mxu1 %vm587_vm0, %v4373_v60 }
 0x10e   :  { %v3570_v63 = vpop.f32.mrb[12].mxu0 }
 0x10f   :  { %v3610_v32 = vpop.f32.mrb[12].mxu1  ;;  %v3571_v11 = vpop.f32.mrb[13].mxu0 }
 0x110   :  { %v3611_v6 = vpop.f32.mrb[13].mxu1  ;;  %v3572_v14 = vadd.f32 %v3571_v11, %v3570_v63  ;;  %v3573_v1 = vpop.f32.mrb[14].mxu0 }
 0x111   :  { %v3612_v0 = vadd.f32 %v3611_v6, %v3610_v32  ;;  %v3613_v4 = vpop.f32.mrb[14].mxu1  ;;  %v3574_v18 = vpop.f32.mrb[15].mxu0 }
 0x112   :  { %v3614_v35 = vpop.f32.mrb[15].mxu1  ;;  %v3575_v15 = vadd.f32 %v3574_v18, %v3573_v1 }
 0x113   :  { %v724_v13 = vadd.f32 %v3612_v0, %v3572_v14  ;;  %v3615_v41 = vadd.f32 %v3614_v35, %v3613_v4  ;;  %2778 = vmatmul.mubr.bf16.gmra.mrb[120].mxu0 %v5264_v38 }
 0x114   :  { %4085 = vmatmul.mubr.msk.bf16.gmra.mrb[96].mxu1 %vm587_vm0, %v4374_v33 }
 0x115   :  { %v727_v12 = vadd.f32 %v3615_v41, %v3575_v15 }
 0x116   :  { %v3632_v19 = vpop.f32.mrb[16].mxu0 }
 0x117   :  { %v4046_v17 = vpop.f32.mrb[16].mxu1  ;;  %v3633_v20 = vpop.f32.mrb[17].mxu0 }
 0x118   :  { %v829_v16 = vpop.f32.mrb[17].mxu1  ;;  %v3634_v22 = vadd.f32 %v3633_v20, %v3632_v19  ;;  %v3635_v30 = vpop.f32.mrb[18].mxu0 }
 0x119   :  { %v4047_v21 = vpop.f32.mrb[18].mxu1  ;;  %v3636_v43 = vpop.f32.mrb[19].mxu0 }
 0x11a   :  { %v832_v23 = vpop.f32.mrb[19].mxu1  ;;  %v3637_v25 = vadd.f32 %v3636_v43, %v3635_v30  ;;  %v765_v36 = vadd.f32 %v3634_v22, %v5377_v24 }
 0x11c   :  { %v5428_v26 = vadd.f32 %v829_v16, %v765_v36  ;;  %v768_v27 = vadd.f32 %v3637_v25, %v5383_v49 }
 0x11e   :  { %v5431_v28 = vadd.f32 %v832_v23, %v768_v27  ;;  %v3638_v29 = vpop.f32.mrb[20].mxu0 }
 0x11f   :  { %v3639_v31 = vpop.f32.mrb[21].mxu0 }
 0x120   :  { %v3640_v50 = vadd.f32 %v3639_v31, %v3638_v29  ;;  %v3641_v37 = vpop.f32.mrb[22].mxu0 }
 0x121   :  { %v3642_v42 = vpop.f32.mrb[23].mxu0  ;;  %v4050_v5 = vpop.f32.mrb[20].mxu1 }
 0x122   :  { %v773_v38 = vadd.f32 %v3640_v50, %v5397_v62  ;;  %v3643_v8 = vadd.f32 %v3642_v42, %v3641_v37  ;;  %v845_v7 = vpop.f32.mrb[21].mxu1 }
 0x123   :  { %v4051_v62 = vpop.f32.mrb[22].mxu1 }
 0x124   :  { %v5434_v45 = vadd.f32 %v4046_v17, %v773_v38  ;;  %v776_v48 = vadd.f32 %v3643_v8, %v5403_v61  ;;  %v848_v52 = vpop.f32.mrb[23].mxu1 }
 0x126   :  { %v5437_v55 = vadd.f32 %v4047_v21, %v776_v48  ;;  %v3644_v24 = vpop.f32.mrb[24].mxu0 }
 0x127   :  { %v3645_v56 = vpop.f32.mrb[25].mxu0 }
 0x128   :  { %v3646_v59 = vadd.f32 %v3645_v56, %v3644_v24  ;;  %v3647_v49 = vpop.f32.mrb[26].mxu0 }
 0x129   :  { %v3648_v58 = vpop.f32.mrb[27].mxu0 }
 0x12a   :  { %v3649_v34 = vadd.f32 %v3648_v58, %v3647_v49  ;;  %v781_v40 = vadd.f32 %v3646_v59, %v716_v47 }
 0x12c   :  { %v784_v44 = vadd.f32 %v3649_v34, %v719_v54  ;;  %v5439_v51 = vadd.f32 %v845_v7, %v781_v40 }
 0x12e   :  { %v5441_v57 = vadd.f32 %v848_v52, %v784_v44  ;;  %v3650_v39 = vpop.f32.mrb[28].mxu0 }
 0x12f   :  { %v3651_v61 = vpop.f32.mrb[29].mxu0 }
 0x130   :  { %v3652_v46 = vadd.f32 %v3651_v61, %v3650_v39  ;;  %v3653_v3 = vpop.f32.mrb[30].mxu0 }
 0x131   :  { %v3654_v2 = vpop.f32.mrb[31].mxu0 }
 0x132   :  { %v789_v9 = vadd.f32 %v3652_v46, %v724_v13  ;;  %v3655_v53 = vadd.f32 %v3654_v2, %v3653_v3 }
 0x134   :  { %v5443_v10 = vadd.f32 %v4050_v5, %v789_v9  ;;  %v792_v63 = vadd.f32 %v3655_v53, %v727_v12 }
 0x136   :  { %v5445_v47 = vadd.f32 %v4051_v62, %v792_v63  ;;  %v3678_v32 = vpop.f32.mrb[32].mxu0 }
 0x137   :  { %v3718_v54 = vpop.f32.mrb[24].mxu1  ;;  %v3679_v6 = vpop.f32.mrb[33].mxu0 }
 0x138   :  { %v3719_v11 = vpop.f32.mrb[25].mxu1  ;;  %v3680_v1 = vadd.f32 %v3679_v6, %v3678_v32  ;;  %v3681_v4 = vpop.f32.mrb[34].mxu0 }
 0x139   :  { %v3720_v14 = vadd.f32 %v3719_v11, %v3718_v54  ;;  %v3721_v0 = vpop.f32.mrb[26].mxu1  ;;  %v3682_v18 = vpop.f32.mrb[35].mxu0 }
 0x13a   :  { %v3722_v60 = vpop.f32.mrb[27].mxu1  ;;  %v3683_v41 = vadd.f32 %v3682_v18, %v3681_v4 }
 0x13b   :  { %v3723_v35 = vadd.f32 %v3722_v60, %v3721_v0  ;;  %v1361_v15 = vadd.f32 %v3720_v14, %v3680_v1 }
 0x13d   :  { %v1364_v13 = vadd.f32 %v3723_v35, %v3683_v41 }
 0x13e   :  { %v3684_v19 = vpop.f32.mrb[36].mxu0 }
 0x13f   :  { %v3724_v17 = vpop.f32.mrb[28].mxu1  ;;  %v3685_v12 = vpop.f32.mrb[37].mxu0 }
 0x140   :  { %v3725_v16 = vpop.f32.mrb[29].mxu1  ;;  %v3686_v21 = vadd.f32 %v3685_v12, %v3684_v19  ;;  %v3687_v22 = vpop.f32.mrb[38].mxu0 }
 0x141   :  { %v3726_v33 = vadd.f32 %v3725_v16, %v3724_v17  ;;  %v3727_v20 = vpop.f32.mrb[30].mxu1  ;;  %v3688_v23 = vpop.f32.mrb[39].mxu0 }
 0x142   :  { %v3728_v30 = vpop.f32.mrb[31].mxu1  ;;  %v3689_v36 = vadd.f32 %v3688_v23, %v3687_v22 }
 0x143   :  { %v3729_v43 = vadd.f32 %v3728_v30, %v3727_v20  ;;  %v1369_v25 = vadd.f32 %v3726_v33, %v3686_v21 }
 0x145   :  { %v1372_v27 = vadd.f32 %v3729_v43, %v3689_v36 }
 0x146   :  { %v3690_v31 = vpop.f32.mrb[40].mxu0 }
 0x147   :  { %v3730_v29 = vpop.f32.mrb[32].mxu1  ;;  %v3691_v37 = vpop.f32.mrb[41].mxu0 }
 0x148   :  { %v3731_v50 = vpop.f32.mrb[33].mxu1  ;;  %v3692_v8 = vadd.f32 %v3691_v37, %v3690_v31  ;;  %v3693_v48 = vpop.f32.mrb[42].mxu0 }
 0x149   :  { %v3732_v42 = vadd.f32 %v3731_v50, %v3730_v29  ;;  %v3733_v38 = vpop.f32.mrb[34].mxu1  ;;  %v3694_v56 = vpop.f32.mrb[43].mxu0 }
 0x14a   :  { %v3734_v24 = vpop.f32.mrb[35].mxu1  ;;  %v3695_v58 = vadd.f32 %v3694_v56, %v3693_v48 }
 0x14b   :  { %v3735_v59 = vadd.f32 %v3734_v24, %v3733_v38  ;;  %v1377_v49 = vadd.f32 %v3732_v42, %v3692_v8 }
 0x14d   :  { %v1380_v34 = vadd.f32 %v3735_v59, %v3695_v58 }
 0x14e   :  { %v3696_v5 = vpop.f32.mrb[44].mxu0 }
 0x14f   :  { %v3736_v40 = vpop.f32.mrb[36].mxu1  ;;  %v3697_v7 = vpop.f32.mrb[45].mxu0 }
 0x150   :  { %v3737_v44 = vpop.f32.mrb[37].mxu1  ;;  %v3698_v39 = vadd.f32 %v3697_v7, %v3696_v5  ;;  %v3699_v61 = vpop.f32.mrb[46].mxu0 }
 0x151   :  { %v3738_v62 = vadd.f32 %v3737_v44, %v3736_v40  ;;  %v3739_v52 = vpop.f32.mrb[38].mxu1  ;;  %v3700_v3 = vpop.f32.mrb[47].mxu0 }
 0x152   :  { %v3740_v46 = vpop.f32.mrb[39].mxu1  ;;  %v3701_v53 = vadd.f32 %v3700_v3, %v3699_v61 }
 0x153   :  { %v3741_v2 = vadd.f32 %v3740_v46, %v3739_v52  ;;  %v1385_v9 = vadd.f32 %v3738_v62, %v3698_v39 }
 0x155   :  { %v1388_v63 = vadd.f32 %v3741_v2, %v3701_v53 }
 0x156   :  { %v3758_v32 = vpop.f32.mrb[48].mxu0 }
 0x157   :  { %v4058_v54 = vpop.f32.mrb[40].mxu1  ;;  %v3759_v6 = vpop.f32.mrb[49].mxu0 }
 0x158   :  { %v1490_v11 = vpop.f32.mrb[41].mxu1  ;;  %v3760_v0 = vadd.f32 %v3759_v6, %v3758_v32  ;;  %v3761_v1 = vpop.f32.mrb[50].mxu0 }
 0x159   :  { %v4059_v14 = vpop.f32.mrb[42].mxu1  ;;  %v3762_v60 = vpop.f32.mrb[51].mxu0 }
 0x15a   :  { %v1493_v4 = vpop.f32.mrb[43].mxu1  ;;  %v3763_v18 = vadd.f32 %v3762_v60, %v3761_v1  ;;  %v1426_v35 = vadd.f32 %v3760_v0, %v1361_v15 }
 0x15c   :  { %v5447_v41 = vadd.f32 %v1490_v11, %v1426_v35  ;;  %v1429_v17 = vadd.f32 %v3763_v18, %v1364_v13 }
 0x15e   :  { %v1521_v16 = vmax.f32 %v5428_v26, %v5447_v41  ;;  %v5451_v12 = vadd.f32 %v1493_v4, %v1429_v17  ;;  %v3764_v33 = vpop.f32.mrb[52].mxu0 }
 0x15f   :  { %v4062_v19 = vpop.f32.mrb[44].mxu1  ;;  %v3765_v21 = vpop.f32.mrb[53].mxu0 }
 0x160   :  { %v1506_v20 = vpop.f32.mrb[45].mxu1  ;;  %v1522_v30 = vmax.f32 %v5431_v28, %v5451_v12  ;;  %v3766_v23 = vadd.f32 %v3765_v21, %v3764_v33  ;;  %v3767_v43 = vpop.f32.mrb[54].mxu0 }
 0x161   :  { %v4063_v22 = vpop.f32.mrb[46].mxu1  ;;  %v3768_v15 = vpop.f32.mrb[55].mxu0 }
 0x162   :  { %v1509_v36 = vpop.f32.mrb[47].mxu1  ;;  %v1434_v29 = vadd.f32 %v3766_v23, %v1369_v25  ;;  %v3769_v31 = vadd.f32 %v3768_v15, %v3767_v43 }
 0x164   :  { %v5455_v13 = vadd.f32 %v4058_v54, %v1434_v29  ;;  %v1437_v50 = vadd.f32 %v3769_v31, %v1372_v27 }
 0x166   :  { %v1523_v37 = vmax.f32 %v5434_v45, %v5455_v13  ;;  %v5459_v42 = vadd.f32 %v4059_v14, %v1437_v50  ;;  %v3770_v38 = vpop.f32.mrb[56].mxu0 }
 0x167   :  { %v3771_v8 = vpop.f32.mrb[57].mxu0 }
 0x168   :  { %v1524_v48 = vmax.f32 %v5437_v55, %v5459_v42  ;;  %v3772_v24 = vadd.f32 %v3771_v8, %v3770_v38  ;;  %v3773_v56 = vpop.f32.mrb[58].mxu0 }
 0x169   :  { %v3774_v59 = vpop.f32.mrb[59].mxu0 }
 0x16a   :  { %v3775_v58 = vadd.f32 %v3774_v59, %v3773_v56  ;;  %v1442_v40 = vadd.f32 %v3772_v24, %v1377_v49 }
 0x16c   :  { %v5463_v25 = vadd.f32 %v1506_v20, %v1442_v40  ;;  %v1445_v5 = vadd.f32 %v3775_v58, %v1380_v34 }
 0x16e   :  { %v1525_v27 = vmax.f32 %v5439_v51, %v5463_v25  ;;  %v5467_v44 = vadd.f32 %v1509_v36, %v1445_v5  ;;  %v3776_v7 = vpop.f32.mrb[60].mxu0 }
 0x16f   :  { %v3777_v62 = vpop.f32.mrb[61].mxu0 }
 0x170   :  { %v1526_v52 = vmax.f32 %v5441_v57, %v5467_v44  ;;  %v3778_v39 = vadd.f32 %v3777_v62, %v3776_v7  ;;  %v3779_v61 = vpop.f32.mrb[62].mxu0 }
 0x171   :  { %v3780_v46 = vpop.f32.mrb[63].mxu0 }
 0x172   :  { %v1450_v3 = vadd.f32 %v3778_v39, %v1385_v9  ;;  %v3781_v2 = vadd.f32 %v3780_v46, %v3779_v61 }
 0x174   :  { %v5471_v53 = vadd.f32 %v4062_v19, %v1450_v3  ;;  %v1453_v49 = vadd.f32 %v3781_v2, %v1388_v63 }
 0x176   :  { %v5473_v34 = vadd.f32 %v4063_v22, %v1453_v49  ;;  %v3804_v32 = vpop.f32.mrb[64].mxu0  ;;  %v1527_v6 = vmax.f32 %v5443_v10, %v5471_v53 }
 0x177   :  { %v3844_v54 = vpop.f32.mrb[48].mxu1  ;;  %v3805_v14 = vpop.f32.mrb[65].mxu0 }
 0x178   :  { %v3845_v11 = vpop.f32.mrb[49].mxu1  ;;  %v3806_v4 = vadd.f32 %v3805_v14, %v3804_v32  ;;  %v3807_v60 = vpop.f32.mrb[66].mxu0  ;;  %v1528_v9 = vmax.f32 %v5445_v47, %v5473_v34 }
 0x179   :  { %v3846_v0 = vadd.f32 %v3845_v11, %v3844_v54  ;;  %v3847_v1 = vpop.f32.mrb[50].mxu1  ;;  %v3808_v35 = vpop.f32.mrb[67].mxu0 }
 0x17a   :  { %v3848_v18 = vpop.f32.mrb[51].mxu1  ;;  %v3809_v19 = vadd.f32 %v3808_v35, %v3807_v60 }
 0x17b   :  { %v3849_v17 = vadd.f32 %v3848_v18, %v3847_v1  ;;  %v2030_v63 = vadd.f32 %v3846_v0, %v3806_v4 }
 0x17d   :  { %v2033_v33 = vadd.f32 %v3849_v17, %v3809_v19 }
 0x17e   :  { %v3810_v21 = vpop.f32.mrb[68].mxu0 }
 0x17f   :  { %v3850_v20 = vpop.f32.mrb[52].mxu1  ;;  %v3811_v23 = vpop.f32.mrb[69].mxu0 }
 0x180   :  { %v3851_v22 = vpop.f32.mrb[53].mxu1  ;;  %v3812_v15 = vadd.f32 %v3811_v23, %v3810_v21  ;;  %v3813_v29 = vpop.f32.mrb[70].mxu0 }
 0x181   :  { %v3852_v43 = vadd.f32 %v3851_v22, %v3850_v20  ;;  %v3853_v36 = vpop.f32.mrb[54].mxu1  ;;  %v3814_v50 = vpop.f32.mrb[71].mxu0 }
 0x182   :  { %v3854_v31 = vpop.f32.mrb[55].mxu1  ;;  %v3815_v24 = vadd.f32 %v3814_v50, %v3813_v29 }
 0x183   :  { %v3855_v38 = vadd.f32 %v3854_v31, %v3853_v36  ;;  %v2038_v8 = vadd.f32 %v3852_v43, %v3812_v15 }
 0x185   :  { %v2041_v56 = vadd.f32 %v3855_v38, %v3815_v24 }
 0x186   :  { %v3816_v58 = vpop.f32.mrb[72].mxu0 }
 0x187   :  { %v3856_v59 = vpop.f32.mrb[56].mxu1  ;;  %v3817_v5 = vpop.f32.mrb[73].mxu0 }
 0x188   :  { %v3857_v40 = vpop.f32.mrb[57].mxu1  ;;  %v3818_v39 = vadd.f32 %v3817_v5, %v3816_v58  ;;  %v3819_v61 = vpop.f32.mrb[74].mxu0 }
 0x189   :  { %v3858_v7 = vadd.f32 %v3857_v40, %v3856_v59  ;;  %v3859_v62 = vpop.f32.mrb[58].mxu1  ;;  %v3820_v3 = vpop.f32.mrb[75].mxu0 }
 0x18a   :  { %v3860_v46 = vpop.f32.mrb[59].mxu1  ;;  %v3821_v54 = vadd.f32 %v3820_v3, %v3819_v61 }
 0x18b   :  { %v3861_v2 = vadd.f32 %v3860_v46, %v3859_v62  ;;  %v2046_v49 = vadd.f32 %v3858_v7, %v3818_v39 }
 0x18d   :  { %v2049_v32 = vadd.f32 %v3861_v2, %v3821_v54 }
 0x18e   :  { %v3822_v14 = vpop.f32.mrb[76].mxu0 }
 0x18f   :  { %v3862_v11 = vpop.f32.mrb[60].mxu1  ;;  %v3823_v1 = vpop.f32.mrb[77].mxu0 }
 0x190   :  { %v3863_v0 = vpop.f32.mrb[61].mxu1  ;;  %v3824_v18 = vadd.f32 %v3823_v1, %v3822_v14  ;;  %v3825_v35 = vpop.f32.mrb[78].mxu0 }
 0x191   :  { %v3864_v4 = vadd.f32 %v3863_v0, %v3862_v11  ;;  %v3865_v60 = vpop.f32.mrb[62].mxu1  ;;  %v3826_v19 = vpop.f32.mrb[79].mxu0 }
 0x192   :  { %v3866_v17 = vpop.f32.mrb[63].mxu1  ;;  %v3827_v22 = vadd.f32 %v3826_v19, %v3825_v35 }
 0x193   :  { %v3867_v20 = vadd.f32 %v3866_v17, %v3865_v60  ;;  %v2054_v21 = vadd.f32 %v3864_v4, %v3824_v18 }
 0x195   :  { %v2057_v23 = vadd.f32 %v3867_v20, %v3827_v22 }
 0x196   :  { %v3884_v36 = vpop.f32.mrb[80].mxu0 }
 0x197   :  { %v4070_v43 = vpop.f32.mrb[64].mxu1  ;;  %v3885_v29 = vpop.f32.mrb[81].mxu0 }
 0x198   :  { %v2159_v15 = vpop.f32.mrb[65].mxu1  ;;  %v3886_v50 = vadd.f32 %v3885_v29, %v3884_v36  ;;  %v3887_v38 = vpop.f32.mrb[82].mxu0 }
 0x199   :  { %v4071_v31 = vpop.f32.mrb[66].mxu1  ;;  %v3888_v59 = vpop.f32.mrb[83].mxu0 }
 0x19a   :  { %v2162_v24 = vpop.f32.mrb[67].mxu1  ;;  %v3889_v58 = vadd.f32 %v3888_v59, %v3887_v38  ;;  %v2095_v40 = vadd.f32 %v3886_v50, %v2030_v63 }
 0x19c   :  { %v2160_v5 = vadd.f32 %v2159_v15, %v2095_v40  ;;  %v2098_v7 = vadd.f32 %v3889_v58, %v2033_v33 }
 0x19e   :  { %v5482_v39 = vmax.f32 %v1521_v16, %v2160_v5  ;;  %v2163_v61 = vadd.f32 %v2162_v24, %v2098_v7  ;;  %v3890_v46 = vpop.f32.mrb[84].mxu0 }
 0x19f   :  { %v4074_v62 = vpop.f32.mrb[68].mxu1  ;;  %v3891_v2 = vpop.f32.mrb[85].mxu0 }
 0x1a0   :  { %v2175_v3 = vpop.f32.mrb[69].mxu1  ;;  %v5487_v11 = vmax.f32 %v1522_v30, %v2163_v61  ;;  %v3892_v14 = vadd.f32 %v3891_v2, %v3890_v46  ;;  %v3893_v63 = vpop.f32.mrb[86].mxu0 }
 0x1a1   :  { %v4075_v54 = vpop.f32.mrb[70].mxu1  ;;  %v3894_v33 = vpop.f32.mrb[87].mxu0 }
 0x1a2   :  { %v2178_v0 = vpop.f32.mrb[71].mxu1  ;;  %v2103_v1 = vadd.f32 %v3892_v14, %v2038_v8  ;;  %v3895_v4 = vadd.f32 %v3894_v33, %v3893_v63 }
 0x1a4   :  { %v2168_v60 = vadd.f32 %v4070_v43, %v2103_v1  ;;  %v2106_v26 = vadd.f32 %v3895_v4, %v2041_v56 }
 0x1a6   :  { %v5492_v41 = vmax.f32 %v1523_v37, %v2168_v60  ;;  %v2171_v16 = vadd.f32 %v4071_v31, %v2106_v26  ;;  %v3896_v18 = vpop.f32.mrb[88].mxu0 }
 0x1a7   :  { %v3897_v35 = vpop.f32.mrb[89].mxu0 }
 0x1a8   :  { %v5497_v28 = vmax.f32 %v1524_v48, %v2171_v16  ;;  %v3898_v12 = vadd.f32 %v3897_v35, %v3896_v18  ;;  %v3899_v30 = vpop.f32.mrb[90].mxu0 }
 0x1a9   :  { %v3900_v17 = vpop.f32.mrb[91].mxu0 }
 0x1aa   :  { %v3901_v8 = vadd.f32 %v3900_v17, %v3899_v30  ;;  %v2111_v19 = vadd.f32 %v3898_v12, %v2046_v49 }
 0x1ac   :  { %v2176_v20 = vadd.f32 %v2175_v3, %v2111_v19  ;;  %v2114_v56 = vadd.f32 %v3901_v8, %v2049_v32 }
 0x1ae   :  { %v5502_v45 = vmax.f32 %v1525_v27, %v2176_v20  ;;  %v2179_v13 = vadd.f32 %v2178_v0, %v2114_v56  ;;  %v3902_v37 = vpop.f32.mrb[92].mxu0 }
 0x1af   :  { %v3903_v22 = vpop.f32.mrb[93].mxu0 }
 0x1b0   :  { %v5507_v55 = vmax.f32 %v1526_v52, %v2179_v13  ;;  %v3904_v42 = vadd.f32 %v3903_v22, %v3902_v37  ;;  %v3905_v48 = vpop.f32.mrb[94].mxu0 }
 0x1b1   :  { %v3906_v43 = vpop.f32.mrb[95].mxu0 }
 0x1b2   :  { %v2119_v36 = vadd.f32 %v3904_v42, %v2054_v21  ;;  %v3907_v49 = vadd.f32 %v3906_v43, %v3905_v48 }
 0x1b4   :  { %v2184_v15 = vadd.f32 %v4074_v62, %v2119_v36  ;;  %v2122_v32 = vadd.f32 %v3907_v49, %v2057_v23 }
 0x1b6   :  { %v2187_v31 = vadd.f32 %v4075_v54, %v2122_v32  ;;  %v3930_v51 = vpop.f32.mrb[96].mxu0  ;;  %v5512_v27 = vmax.f32 %v1527_v6, %v2184_v15 }
 0x1b7   :  { %v3970_v29 = vpop.f32.mrb[72].mxu1  ;;  %v3931_v50 = vpop.f32.mrb[97].mxu0 }
 0x1b8   :  { %v3971_v25 = vpop.f32.mrb[73].mxu1  ;;  %v3932_v52 = vadd.f32 %v3931_v50, %v3930_v51  ;;  %v3933_v38 = vpop.f32.mrb[98].mxu0  ;;  %v5517_v21 = vmax.f32 %v1528_v9, %v2187_v31 }
 0x1b9   :  { %v3972_v57 = vadd.f32 %v3971_v25, %v3970_v29  ;;  %v3973_v44 = vpop.f32.mrb[74].mxu1  ;;  %v3934_v23 = vpop.f32.mrb[99].mxu0 }
 0x1ba   :  { %v3974_v24 = vpop.f32.mrb[75].mxu1  ;;  %v3935_v40 = vadd.f32 %v3934_v23, %v3933_v38  ;;  %v2888_v31 = vpop.permute.xlu1 %2887 }
 0x1bb   :  { %v3975_v59 = vadd.f32 %v3974_v24, %v3973_v44  ;;  %v2699_v58 = vadd.f32 %v3972_v57, %v3932_v52  ;;  %v2878_v25 = vpop.permute.xlu0 %2877 }
 0x1bd   :  { %v2702_v5 = vadd.f32 %v3975_v59, %v3935_v40 }
 0x1be   :  { %v3936_v10 = vpop.f32.mrb[100].mxu0 }
 0x1bf   :  { %v3976_v7 = vpop.f32.mrb[76].mxu1  ;;  %v3937_v6 = vpop.f32.mrb[101].mxu0 }
 0x1c0   :  { %v3977_v53 = vpop.f32.mrb[77].mxu1  ;;  %v3938_v46 = vadd.f32 %v3937_v6, %v3936_v10  ;;  %v3939_v3 = vpop.f32.mrb[102].mxu0 }
 0x1c1   :  { %v3978_v62 = vadd.f32 %v3977_v53, %v3976_v7  ;;  %v3979_v61 = vpop.f32.mrb[78].mxu1  ;;  %v3940_v54 = vpop.f32.mrb[103].mxu0 }
 0x1c2   :  { %v3980_v2 = vpop.f32.mrb[79].mxu1  ;;  %v3941_v47 = vadd.f32 %v3940_v54, %v3939_v3 }
 0x1c3   :  { %v3981_v14 = vadd.f32 %v3980_v2, %v3979_v61  ;;  %v5519_v63 = vadd.f32 %v3978_v62, %v3938_v46  ;;  %v2893_v61 = vpop.permute.xlu1 %2892  ;;  %v2883_v2 = vpop.permute.xlu0 %2882 }
 0x1c5   :  { %v5521_v34 = vadd.f32 %v3981_v14, %v3941_v47 }
 0x1c6   :  { %v3942_v0 = vpop.f32.mrb[104].mxu0 }
 0x1c7   :  { %v3982_v9 = vpop.f32.mrb[80].mxu1  ;;  %v3943_v1 = vpop.f32.mrb[105].mxu0 }
 0x1c8   :  { %v3983_v33 = vpop.f32.mrb[81].mxu1  ;;  %v3944_v26 = vadd.f32 %v3943_v1, %v3942_v0  ;;  %v3945_v16 = vpop.f32.mrb[106].mxu0 }
 0x1c9   :  { %v3984_v4 = vadd.f32 %v3983_v33, %v3982_v9  ;;  %v3985_v60 = vpop.f32.mrb[82].mxu1  ;;  %v3946_v35 = vpop.f32.mrb[107].mxu0 }
 0x1ca   :  { %v3986_v18 = vpop.f32.mrb[83].mxu1  ;;  %v3947_v17 = vadd.f32 %v3946_v35, %v3945_v16 }
 0x1cb   :  { %v3987_v12 = vadd.f32 %v3986_v18, %v3985_v60  ;;  %v5523_v30 = vadd.f32 %v3984_v4, %v3944_v26 }
 0x1cd   :  { %v5525_v8 = vadd.f32 %v3987_v12, %v3947_v17  ;;  %v2898_v12 = vpop.permute.xlu0 %2897 }
 0x1ce   :  { %v3948_v20 = vpop.f32.mrb[108].mxu0 }
 0x1cf   :  { %v3988_v19 = vpop.f32.mrb[84].mxu1  ;;  %v3949_v13 = vpop.f32.mrb[109].mxu0 }
 0x1d0   :  { %v3989_v56 = vpop.f32.mrb[85].mxu1  ;;  %v3950_v42 = vadd.f32 %v3949_v13, %v3948_v20  ;;  %v3951_v48 = vpop.f32.mrb[110].mxu0 }
 0x1d1   :  { %v3990_v37 = vadd.f32 %v3989_v56, %v3988_v19  ;;  %v3991_v22 = vpop.f32.mrb[86].mxu1  ;;  %v3952_v36 = vpop.f32.mrb[111].mxu0 }
 0x1d2   :  { %v3992_v43 = vpop.f32.mrb[87].mxu1  ;;  %v3953_v32 = vadd.f32 %v3952_v36, %v3951_v48  ;;  %v2903_v13 = vpop.permute.xlu1 %2902 }
 0x1d3   :  { %v3993_v49 = vadd.f32 %v3992_v43, %v3991_v22  ;;  %v2723_v15 = vadd.f32 %v3990_v37, %v3950_v42 }
 0x1d5   :  { %v2726_v29 = vadd.f32 %v3993_v49, %v3953_v32 }
 0x1d6   :  { %v4010_v57 = vpop.f32.mrb[112].mxu0 }
 0x1d7   :  { %v4028_v51 = vpop.f32.mrb[88].mxu1  ;;  %v4011_v38 = vpop.f32.mrb[113].mxu0 }
 0x1d8   :  { %v4029_v50 = vpop.f32.mrb[89].mxu1  ;;  %v4012_v23 = vadd.f32 %v4011_v38, %v4010_v57  ;;  %v4013_v59 = vpop.f32.mrb[114].mxu0 }
 0x1d9   :  { %v4030_v44 = vadd.f32 %v4029_v50, %v4028_v51  ;;  %v4031_v52 = vpop.f32.mrb[90].mxu1  ;;  %v4014_v7 = vpop.f32.mrb[115].mxu0 }
 0x1da   :  { %v4032_v24 = vpop.f32.mrb[91].mxu1  ;;  %v4015_v53 = vadd.f32 %v4014_v7, %v4013_v59  ;;  %v2764_v6 = vadd.f32 %v4012_v23, %v2699_v58  ;;  %v2908_v50 = vpop.permute.xlu0 %2907 }
 0x1db   :  { %v4033_v40 = vadd.f32 %v4032_v24, %v4031_v52  ;;  %v2788_v10 = vadd.f32 %v4030_v44, %v2723_v15 }
 0x1dc   :  { %v2767_v46 = vadd.f32 %v4015_v53, %v2702_v5 }
 0x1dd   :  { %v2791_v62 = vadd.f32 %v4033_v40, %v2726_v29 }
 0x1de   :  { %v4016_v14 = vpop.f32.mrb[116].mxu0 }
 0x1df   :  { %v4082_v3 = vpop.f32.mrb[92].mxu1  ;;  %v4017_v0 = vpop.f32.mrb[117].mxu0 }
 0x1e0   :  { %v2828_v54 = vpop.f32.mrb[93].mxu1  ;;  %v4018_v1 = vadd.f32 %v4017_v0, %v4016_v14  ;;  %v4019_v4 = vpop.f32.mrb[118].mxu0 }
 0x1e1   :  { %v2829_v47 = vadd.f32 %v2828_v54, %v2764_v6  ;;  %v4083_v9 = vpop.f32.mrb[94].mxu1  ;;  %v4020_v16 = vpop.f32.mrb[119].mxu0 }
 0x1e2   :  { %v2831_v33 = vpop.f32.mrb[95].mxu1  ;;  %v2772_v18 = vadd.f32 %v4018_v1, %v5519_v63  ;;  %v4021_v58 = vadd.f32 %v4020_v16, %v4019_v4 }
 0x1e3   :  { %v2859_v60 = vmax.f32 %v5482_v39, %v2829_v47  ;;  %v2832_v26 = vadd.f32 %v2831_v33, %v2767_v46 }
 0x1e4   :  { %v2837_v17 = vadd.f32 %v4082_v3, %v2772_v18  ;;  %v2775_v19 = vadd.f32 %v4021_v58, %v5521_v34 }
 0x1e5   :  { %v2915_v35 = vadd.f32 %v2878_v25, %v2859_v60  ;;  %v2860_v5 = vmax.f32 %v5487_v11, %v2832_v26 }
 0x1e6   :  { %v2861_v22 = vmax.f32 %v5492_v41, %v2837_v17  ;;  %v2840_v39 = vadd.f32 %v4083_v9, %v2775_v19  ;;  %v4022_v43 = vpop.f32.mrb[120].mxu0 }
 0x1e7   :  { %v2923_v20 = vmax.f32 %v2915_v35, 0.0  ;;  %v2916_v56 = vadd.f32 %v2883_v2, %v2860_v5  ;;  %v4086_v37 = vpop.f32.mrb[96].mxu1  ;;  %v4023_v15 = vpop.f32.mrb[121].mxu0 }
 0x1e8   :  { %v2853_v42 = vadd.f32 %v4086_v37, %v2788_v10  ;;  %v2844_v48 = vpop.f32.mrb[97].mxu1  ;;  %v2917_v11 = vadd.f32 %v2888_v31, %v2861_v22  ;;  %v2862_v32 = vmax.f32 %v5497_v28, %v2840_v39  ;;  %v4025_v51 = vpop.f32.mrb[122].mxu0  ;;  %v4024_v57 = vadd.f32 %v4023_v15, %v4022_v43 }
 0x1e9   :  { %v3528_v63 = vpack.c.bf16 %v2923_v20, %v2923_v20  ;;  %v2924_v36 = vmax.f32 %v2916_v56, 0.0  ;;  %v4087_v49 = vpop.f32.mrb[98].mxu1  ;;  %v4026_v44 = vpop.f32.mrb[123].mxu0 }
 0x1ea   :  { %v2856_v29 = vadd.f32 %v4087_v49, %v2791_v62  ;;  %v2865_v34 = vmax.f32 %v5512_v27, %v2853_v42  ;;  %v2847_v25 = vpop.f32.mrb[99].mxu1  ;;  %v2925_v52 = vmax.f32 %v2917_v11, 0.0  ;;  %v2918_v38 = vadd.f32 %v2893_v61, %v2862_v32  ;;  %v2913_v28 = vpop.permute.xlu1 %2912 }
 0x1eb   :  { %2964 = vst.msk [vmem:[%s5574_s3] sm:$0xf] %vm2963_vm1, %v3528_v63  ;;  %v3529_v41 = vpack.c.bf16 %v2924_v36, %v2924_v36  ;;  %v2780_v27 = vadd.f32 %v4024_v57, %v5523_v30  ;;  %v4027_v23 = vadd.f32 %v4026_v44, %v4025_v51 }
 0x1ec   :  { %v2866_v31 = vmax.f32 %v5517_v21, %v2856_v29  ;;  %v2921_v24 = vadd.f32 %v2908_v50, %v2865_v34  ;;  %v3530_v59 = vpack.c.bf16 %v2925_v52, %v2925_v52  ;;  %v2926_v40 = vmax.f32 %v2918_v38, 0.0 }
 0x1ed   :  { %2965 = vst.msk [vmem:[%s5574_s3 + $0x4] sm:$0xf] %vm2963_vm1, %v3529_v41  ;;  %v2845_v53 = vadd.f32 %v2844_v48, %v2780_v27  ;;  %v2783_v6 = vadd.f32 %v4027_v23, %v5525_v8 }
 0x1ee   :  { %v2922_v7 = vadd.f32 %v2913_v28, %v2866_v31  ;;  %v2929_v10 = vmax.f32 %v2921_v24, 0.0  ;;  %2966 = vst.msk [vmem:[%s5574_s3 + $0x8] sm:$0xf] %vm2963_vm1, %v3530_v59  ;;  %v3531_v21 = vpack.c.bf16 %v2926_v40, %v2926_v40 }
 0x1ef   :  { %v2863_v46 = vmax.f32 %v5502_v45, %v2845_v53  ;;  %v2848_v3 = vadd.f32 %v2847_v25, %v2783_v6 }
 0x1f0   :  { %v2930_v62 = vmax.f32 %v2922_v7, 0.0  ;;  %v3534_v61 = vpack.c.bf16 %v2929_v10, %v2929_v10  ;;  %2967 = vst.msk [vmem:[%s5574_s3 + $0xc] sm:$0xf] %vm2963_vm1, %v3531_v21 }
 0x1f1   :  { %v2919_v8 = vadd.f32 %v2898_v12, %v2863_v46  ;;  %v2864_v2 = vmax.f32 %v5507_v55, %v2848_v3 }
 0x1f2   :  { %v3535_v30 = vpack.c.bf16 %v2930_v62, %v2930_v62  ;;  %2970 = vst.msk [vmem:[%s5574_s3 + $0x18] sm:$0xf] %vm2963_vm1, %v3534_v61 }
 0x1f3   :  { %v2927_v45 = vmax.f32 %v2919_v8, 0.0  ;;  %v2920_v54 = vadd.f32 %v2903_v13, %v2864_v2 }
 0x1f4   :  { %2971 = vst.msk [vmem:[%s5574_s3 + $0x1c] sm:$0xf] %vm2963_vm1, %v3535_v30 }
 0x1f5   :  { %v3532_v14 = vpack.c.bf16 %v2927_v45, %v2927_v45  ;;  %v2928_v47 = vmax.f32 %v2920_v54, 0.0 }
 0x1f7   :  { %2968 = vst.msk [vmem:[%s5574_s3 + $0x10] sm:$0xf] %vm2963_vm1, %v3532_v14  ;;  %v3533_v9 = vpack.c.bf16 %v2928_v47, %v2928_v47 }
 0x1f9   :  { %2969 = vst.msk [vmem:[%s5574_s3 + $0x14] sm:$0xf] %vm2963_vm1, %v3533_v9 }

// kernel: operator_classifier_forward.5
= control target key start
LH: loop header
LB: loop body
LE: loop exit
PB: predicated region body
PF: predicated region fallthrough
CT: control target
= control target key end

     0   :  { %v163_v28 = vlaneseq  ;;  %v1122_v36 = vmov 1966171168   ;;  %s1388_s0 = inlined_call_operand.vmem [shape: bf16[2,1024], index: 0, kind: input, shape index: {}]   ;;  %s1389_s1 = inlined_call_operand.vmem [shape: bf16[1024,32], index: 1, kind: input, shape index: {}]   ;;  %s1390_s2 = inlined_call_operand.vmem [shape: f32[1,32], index: 2, kind: input, shape index: {}]   ;;  %s1391_s3 = inlined_call_operand.vmem [shape: bf16[32,4], index: 3, kind: input, shape index: {}]   ;;  %s1392_s4 = inlined_call_operand.vmem [shape: f32[1,4], index: 4, kind: input, shape index: {}]   ;;  %s1393_s5 = inlined_call_operand.hbm [shape: f32[2,4], index: 5, kind: output, shape index: {}]  }
   0x1   :  { %v1027_v0 = vld [vmem:[%s1389_s1 + $0x40] sm:$0xff]   ;;  %v1031_v4 = vld [vmem:[%s1389_s1 + $0x48] sm:$0xff]   ;;  %v1035_v8 = vld [vmem:[%s1389_s1 + $0x50] sm:$0xff]   ;;  %v161_v37 = vunpack.c.l.s4 %v1122_v36 }
   0x2   :  { %v1028_v1 = vld [vmem:[%s1389_s1 + $0xc0] sm:$0xff]   ;;  %924 = vmatprep.subr.bf16.mxu0 %v1027_v0  ;;  %v1032_v5 = vld [vmem:[%s1389_s1 + $0xc8] sm:$0xff]   ;;  %v1036_v9 = vld [vmem:[%s1389_s1 + $0xd0] sm:$0xff]   ;;  %v164_v33 = vshrl.u32 %v163_v28, 7 }
   0x3   :  { %v1029_v2 = vld [vmem:[%s1389_s1] sm:$0xff]   ;;  %946 = vmatprep.subr.bf16.mxu1 %v1028_v1  ;;  %v1033_v6 = vld [vmem:[%s1389_s1 + $0x8] sm:$0xff]   ;;  %v1037_v10 = vld [vmem:[%s1389_s1 + $0x10] sm:$0xff]   ;;  %v162_v40 = vunpack.c.0.s8 %v161_v37 }
   0x4   :  { %v1030_v3 = vld [vmem:[%s1389_s1 + $0x80] sm:$0xff]   ;;  %925 = vmatpush3.bf16.msra.mxu0 %v1029_v2  ;;  %v1034_v7 = vld [vmem:[%s1389_s1 + $0x88] sm:$0xff]   ;;  %v1038_v11 = vld [vmem:[%s1389_s1 + $0x90] sm:$0xff]  }
   0x5   :  { %947 = vmatpush3.bf16.msra.mxu1 %v1030_v3  ;;  %926 = vmatprep.subr.bf16.mxu0 %v1031_v4  ;;  %v1039_v12 = vld [vmem:[%s1389_s1 + $0x58] sm:$0xff]   ;;  %v1043_v16 = vld [vmem:[%s1389_s1 + $0x60] sm:$0xff]   ;;  %v1047_v20 = vld [vmem:[%s1389_s1 + $0x68] sm:$0xff]   ;;  %v1261_v41 = vsub.s32 %v162_v40, %v164_v33 }
   0x6   :  { %948 = vmatprep.subr.bf16.mxu1 %v1032_v5  ;;  %v1040_v13 = vld [vmem:[%s1389_s1 + $0xd8] sm:$0xff]   ;;  %v1044_v17 = vld [vmem:[%s1389_s1 + $0xe0] sm:$0xff]   ;;  %v1048_v21 = vld [vmem:[%s1389_s1 + $0xe8] sm:$0xff]  }
   0x7   :  { %v1041_v14 = vld [vmem:[%s1389_s1 + $0x18] sm:$0xff]   ;;  %v1045_v18 = vld [vmem:[%s1389_s1 + $0x20] sm:$0xff]   ;;  %v1049_v22 = vld [vmem:[%s1389_s1 + $0x28] sm:$0xff]  }
   0x8   :  { %927 = vmatpush3.bf16.msra.mxu0 %v1033_v6  ;;  %v1042_v15 = vld [vmem:[%s1389_s1 + $0x98] sm:$0xff]   ;;  %v1046_v19 = vld [vmem:[%s1389_s1 + $0xa0] sm:$0xff]   ;;  %v1050_v23 = vld [vmem:[%s1389_s1 + $0xa8] sm:$0xff]  }
   0x9   :  { %949 = vmatpush3.bf16.msra.mxu1 %v1034_v7  ;;  %928 = vmatprep.subr.bf16.mxu0 %v1035_v8  ;;  %v1051_v24 = vld [vmem:[%s1389_s1 + $0x70] sm:$0xff]   ;;  %v1055_v29 = vld [vmem:[%s1389_s1 + $0x78] sm:$0xff]   ;;  %v22_v34 = vld [vmem:[%s1388_s0] sm:$0xff] }
   0xa   :  { %950 = vmatprep.subr.bf16.mxu1 %v1036_v9  ;;  %v1052_v25 = vld [vmem:[%s1389_s1 + $0xf0] sm:$0xff]   ;;  %v1056_v30 = vld [vmem:[%s1389_s1 + $0xf8] sm:$0xff]   ;;  %v1060_v35 = vld [vmem:[%s1389_s1 + $0x140] sm:$0xff]   ;;  %v159_v39 = vcombine.high %v22_v34, %v22_v34  ;;  %v166_v42 = vrot.slane %v22_v34, %v1261_v41 }
   0xb   :  { %v1053_v26 = vld [vmem:[%s1389_s1 + $0x30] sm:$0xff]   ;;  %v1057_v31 = vld [vmem:[%s1389_s1 + $0x38] sm:$0xff]   ;;  %v1061_v38 = vld [vmem:[%s1389_s1 + $0x1c0] sm:$0xff]  }
   0xc   :  { %929 = vmatpush3.bf16.msra.mxu0 %v1037_v10  ;;  %v1054_v27 = vld [vmem:[%s1389_s1 + $0xb0] sm:$0xff]   ;;  %v1058_v32 = vld [vmem:[%s1389_s1 + $0xb8] sm:$0xff]   ;;  %v1265_v43 = vrot.slane %v159_v39, %v1261_v41  ;;  %v174_v44 = vcombine.high %v166_v42, %v166_v42  ;;  %v182_v45 = vrot.slane %v166_v42, %v1261_v41  ;;  %v1062_v47 = vld [vmem:[%s1389_s1 + $0x100] sm:$0xff]  }
   0xd   :  { %951 = vmatpush3.bf16.msra.mxu1 %v1038_v11  ;;  %930 = vmatprep.subr.bf16.mxu0 %v1039_v12  ;;  %v1063_v49 = vld [vmem:[%s1389_s1 + $0x180] sm:$0xff]   ;;  %v1064_v52 = vld [vmem:[%s1389_s1 + $0x148] sm:$0xff]   ;;  %v1068_v58 = vld [vmem:[%s1389_s1 + $0x150] sm:$0xff]  }
   0xe   :  { %952 = vmatprep.subr.bf16.mxu1 %v1040_v13  ;;  %v175_v46 = vcombine.high %v1265_v43, %v1265_v43  ;;  %v196_v48 = vrot.slane %v174_v44, %v1261_v41  ;;  %v204_v51 = vcombine.high %v182_v45, %v182_v45  ;;  %v1065_v54 = vld [vmem:[%s1389_s1 + $0x1c8] sm:$0xff]   ;;  %v1069_v59 = vld [vmem:[%s1389_s1 + $0x1d0] sm:$0xff]   ;;  %v1072_v62 = vld [vmem:[%s1389_s1 + $0x158] sm:$0xff]  }
   0xf   :  { %v1066_v55 = vld [vmem:[%s1389_s1 + $0x108] sm:$0xff]   ;;  %v1070_v60 = vld [vmem:[%s1389_s1 + $0x110] sm:$0xff]   ;;  %v1073_v63 = vld [vmem:[%s1389_s1 + $0x1d8] sm:$0xff]  }
  0x10   :  { %931 = vmatpush3.bf16.msra.mxu0 %v1041_v14  ;;  %v203_v50 = vrot.slane %v175_v46, %v1261_v41  ;;  %632 = vmatprep.mubr.bf16.mxu0 %v196_v48  ;;  %v206_v53 = vcombine.high %v196_v48, %v196_v48  ;;  %v1067_v57 = vld [vmem:[%s1389_s1 + $0x188] sm:$0xff]   ;;  %v1071_v61 = vld [vmem:[%s1389_s1 + $0x190] sm:$0xff]   ;;  %v1074_v0 = vld [vmem:[%s1389_s1 + $0x118] sm:$0xff]  }
  0x11   :  { %953 = vmatpush3.bf16.msra.mxu1 %v1042_v15  ;;  %932 = vmatprep.subr.bf16.mxu0 %v1043_v16  ;;  %v1075_v1 = vld [vmem:[%s1389_s1 + $0x198] sm:$0xff]   ;;  %v1076_v2 = vld [vmem:[%s1389_s1 + $0x160] sm:$0xff]   ;;  %v1080_v6 = vld [vmem:[%s1389_s1 + $0x168] sm:$0xff]  }
  0x12   :  { %954 = vmatprep.subr.bf16.mxu1 %v1044_v17  ;;  %v207_v56 = vcombine.high %v203_v50, %v203_v50  ;;  %672 = vmatprep.mubr.bf16.mxu1 %v206_v53  ;;  %v1077_v3 = vld [vmem:[%s1389_s1 + $0x1e0] sm:$0xff]   ;;  %v1081_v7 = vld [vmem:[%s1389_s1 + $0x1e8] sm:$0xff]   ;;  %v1084_v10 = vld [vmem:[%s1389_s1 + $0x170] sm:$0xff]  }
  0x13   :  { %v1078_v4 = vld [vmem:[%s1389_s1 + $0x120] sm:$0xff]   ;;  %v1082_v8 = vld [vmem:[%s1389_s1 + $0x128] sm:$0xff]  }
  0x14   :  { %933 = vmatpush3.bf16.msra.mxu0 %v1045_v18  ;;  %v1079_v5 = vld [vmem:[%s1389_s1 + $0x1a0] sm:$0xff]   ;;  %v1083_v9 = vld [vmem:[%s1389_s1 + $0x1a8] sm:$0xff]  }
  0x15   :  { %955 = vmatpush3.bf16.msra.mxu1 %v1046_v19  ;;  %934 = vmatprep.subr.bf16.mxu0 %v1047_v20 }
  0x16   :  { %956 = vmatprep.subr.bf16.mxu1 %v1048_v21 }
  0x18   :  { %935 = vmatpush3.bf16.msra.mxu0 %v1049_v22 }
  0x19   :  { %957 = vmatpush3.bf16.msra.mxu1 %v1050_v23  ;;  %936 = vmatprep.subr.bf16.mxu0 %v1051_v24 }
  0x1a   :  { %958 = vmatprep.subr.bf16.mxu1 %v1052_v25 }
  0x1c   :  { %937 = vmatpush3.bf16.msra.mxu0 %v1053_v26 }
  0x1d   :  { %959 = vmatpush3.bf16.msra.mxu1 %v1054_v27  ;;  %938 = vmatprep.subr.bf16.mxu0 %v1055_v29 }
  0x1e   :  { %960 = vmatprep.subr.bf16.mxu1 %v1056_v30 }
  0x20   :  { %939 = vmatpush3.bf16.msra.mxu0 %v1057_v31 }
  0x21   :  { %961 = vmatpush3.bf16.msra.mxu1 %v1058_v32  ;;  %968 = vmatprep.subr.bf16.mxu0 %v1060_v35 }
  0x22   :  { %990 = vmatprep.subr.bf16.mxu1 %v1061_v38 }
  0x23   :  { %633 = vmatmul.mubr.bf16.vlgmr.msra.gmra.mrb[0].mxu0 %v182_v45 }
  0x24   :  { %969 = vmatpush3.bf16.msra.mxu0 %v1062_v47  ;;  %673 = vmatmul.mubr.bf16.vlgmr.msra.gmra.mrb[0].mxu1 %v204_v51 }
  0x25   :  { %970 = vmatprep.subr.bf16.mxu0 %v1064_v52  ;;  %991 = vmatpush3.bf16.msra.mxu1 %v1063_v49 }
  0x26   :  { %712 = vmatprep.mubr.bf16.mxu0 %v203_v50  ;;  %992 = vmatprep.subr.bf16.mxu1 %v1065_v54 }
  0x27   :  { %752 = vmatprep.mubr.bf16.mxu1 %v207_v56 }
  0x28   :  { %971 = vmatpush3.bf16.msra.mxu0 %v1066_v55 }
  0x29   :  { %972 = vmatprep.subr.bf16.mxu0 %v1068_v58  ;;  %993 = vmatpush3.bf16.msra.mxu1 %v1067_v57 }
  0x2a   :  { %994 = vmatprep.subr.bf16.mxu1 %v1069_v59 }
  0x2c   :  { %973 = vmatpush3.bf16.msra.mxu0 %v1070_v60 }
  0x2d   :  { %974 = vmatprep.subr.bf16.mxu0 %v1072_v62  ;;  %995 = vmatpush3.bf16.msra.mxu1 %v1071_v61 }
  0x2e   :  { %996 = vmatprep.subr.bf16.mxu1 %v1073_v63 }
  0x30   :  { %975 = vmatpush3.bf16.msra.mxu0 %v1074_v0 }
  0x31   :  { %976 = vmatprep.subr.bf16.mxu0 %v1076_v2  ;;  %997 = vmatpush3.bf16.msra.mxu1 %v1075_v1 }
  0x32   :  { %998 = vmatprep.subr.bf16.mxu1 %v1077_v3 }
  0x34   :  { %977 = vmatpush3.bf16.msra.mxu0 %v1078_v4 }
  0x35   :  { %978 = vmatprep.subr.bf16.mxu0 %v1080_v6  ;;  %999 = vmatpush3.bf16.msra.mxu1 %v1079_v5 }
  0x36   :  { %10 = vsyncpa [#allocation3], 0  ;;  %1000 = vmatprep.subr.bf16.mxu1 %v1081_v7  ;;  %v1085_v11 = vld [vmem:[%s1389_s1 + $0x1f0] sm:$0xff]   ;;  %v1088_v13 = vld [vmem:[%s1389_s1 + $0x178] sm:$0xff]   ;;  %v189_v17 = vrot.slane %v1265_v43, %v1261_v41  ;;  %v1123_v21 = vmov 0.0   ;;  %vm1124_vm0 = vmmov 0  }
  0x37   :  { %v1086_v12 = vld [vmem:[%s1389_s1 + $0x130] sm:$0xff]   ;;  %v1089_v15 = vld [vmem:[%s1389_s1 + $0x1f8] sm:$0xff]   ;;  %v1092_v20 = vld [vmem:[%s1391_s3] sm:$0xff]   ;;  %vm785_vm1 = vcmask 261120   ;;  %s1125_s25 = smov [#allocation2]   ;;  %vm839_vm2 = vcmask 25600  }
  0x38   :  { %979 = vmatpush3.bf16.msra.mxu0 %v1082_v8  ;;  %v1087_v14 = vld [vmem:[%s1389_s1 + $0x1b0] sm:$0xff]   ;;  %v1090_v16 = vld [vmem:[%s1389_s1 + $0x138] sm:$0xff]   ;;  %v205_v19 = vcombine.high %v189_v17, %v189_v17  ;;  %v1093_v22 = vld [vmem:[%s1391_s3 + $0x8] sm:$0xff]   ;;  %s847_s26 = sshll.u32 %s1125_s25, 4  ;;  %s848_s26 = int_to_ptr.vmem [resolvable:$true] %s847_s26 }
  0x39   :  { %980 = vmatprep.subr.bf16.mxu0 %v1084_v10  ;;  %1001 = vmatpush3.bf16.msra.mxu1 %v1083_v9  ;;  %v1091_v18 = vld [vmem:[%s1389_s1 + $0x1b8] sm:$0xff]   ;;  %v855_v24 = vld [vmem:[%s1390_s2] ss:$0 sm:$0xff]  ;;  %p1103_p1 = scmp.lt.s32.totalorder %s848_s26, %s848_s26 }
  0x3a   :  { %1002 = vmatprep.subr.bf16.mxu1 %v1085_v11  ;;  %v920_v50 = vld [vmem:[%s1392_s4] ss:$0 sm:$0xff]  ;;  %s1098_s4 = scalar_lea.vmem %s848_s26, 32 }
  0x3b   :  { %p1099_p0 = scmp.ne.s32.totalorder %s848_s26, %s1098_s4  ;;  %p1104_p2 = scmp.lt.s32.totalorder %s1098_s4, %s1098_s4 }
  0x3c   :  { %981 = vmatpush3.bf16.msra.mxu0 %v1086_v12 }
  0x3d   :  { %982 = vmatprep.subr.bf16.mxu0 %v1088_v13  ;;  %1003 = vmatpush3.bf16.msra.mxu1 %v1087_v14  ;;  %p1105_p3 = por %p1104_p2, %p1103_p1 }
  0x3e   :  { %1004 = vmatprep.subr.bf16.mxu1 %v1089_v15 }
  0x3f   :  { %p1106_p4 = pnand %p1105_p3, %p1099_p0 }
  0x40   :  { %983 = vmatpush3.bf16.msra.mxu0 %v1090_v16 }
  0x41   :  { %1005 = vmatpush3.bf16.msra.mxu1 %v1091_v18  ;;  %1015 = vmatprep.subr.bf16.mxu0 %v1123_v21 }
  0x43   :  { %713 = vmatmul.mubr.bf16.vlgmr.msra.gmra.mrb[4].mxu0 %v189_v17 }
  0x44   :  { %753 = vmatmul.mubr.bf16.vlgmr.msra.gmra.mrb[4].mxu1 %v205_v19  ;;  %1016 = vmatpush3.bf16.msra.mxu0 %v1092_v20 }
  0x45   :  { %1017 = vmatprep.subr.bf16.mxu0 %v1123_v21  ;;  %1019 = vmatprep.mubr.msk.bf16.mxu0 %vm1124_vm0, %v1123_v21 }
  0x48   :  { %1018 = vmatpush3.bf16.msra.mxu0 %v1093_v22 }
  0xf6   :  { %v940_v23 = vpop.f32.mrb[0].mxu0 }
  0xf7   :  { %v941_v25 = vpop.f32.mrb[1].mxu0  ;;  %v962_v26 = vpop.f32.mrb[0].mxu1 }
  0xf8   :  { %v942_v27 = vadd.f32 %v941_v25, %v940_v23  ;;  %v943_v28 = vpop.f32.mrb[2].mxu0  ;;  %v963_v29 = vpop.f32.mrb[1].mxu1 }
  0xf9   :  { %v944_v30 = vpop.f32.mrb[3].mxu0  ;;  %v964_v32 = vadd.f32 %v963_v29, %v962_v26  ;;  %v965_v33 = vpop.f32.mrb[2].mxu1 }
  0xfa   :  { %v635_v31 = vadd.f32 %v942_v27, %v855_v24  ;;  %v966_v34 = vpop.f32.mrb[3].mxu1 }
  0xfc   :  { %v675_v35 = vadd.f32 %v964_v32, %v635_v31 }
 0x116   :  { %v984_v36 = vpop.f32.mrb[4].mxu0 }
 0x117   :  { %v985_v37 = vpop.f32.mrb[5].mxu0  ;;  %v1006_v38 = vpop.f32.mrb[4].mxu1 }
 0x118   :  { %v986_v39 = vadd.f32 %v985_v37, %v984_v36  ;;  %v987_v40 = vpop.f32.mrb[6].mxu0  ;;  %v1007_v41 = vpop.f32.mrb[5].mxu1 }
 0x119   :  { %v988_v42 = vpop.f32.mrb[7].mxu0  ;;  %v1008_v44 = vadd.f32 %v1007_v41, %v1006_v38  ;;  %v1009_v45 = vpop.f32.mrb[6].mxu1 }
 0x11a   :  { %v715_v43 = vadd.f32 %v986_v39, %v675_v35  ;;  %v1010_v46 = vpop.f32.mrb[7].mxu1 }
 0x11c   :  { %v755_v47 = vadd.f32 %v1008_v44, %v715_v43 }
 0x11e   :  { %v760_v48 = vmax.f32 %v755_v47, 0.0 }
 0x120   :  { %v761_v49 = vpack.c.bf16 %v760_v48, %v760_v48 }
 0x122   :  { %1020 = vmatmul.mubr.msk.bf16.vlgmr.msra.gmra.mrb[8].mxu0 %vm785_vm1, %v761_v49 }
 0x1f5   :  { %v823_v51 = vpop.f32.mrb[8].mxu0 }
 0x1f6   :  { %v824_v52 = vadd.f32 %v920_v50, %v823_v51  ;;  %v1021_v53 = vpop.f32.mrb[9].mxu0 }
 0x1f7   :  { %v826_v54 = vpop.f32.mrb[10].mxu0 }
 0x1f8   :  { %v829_v55 = vand.u32 2147483647, %v824_v52  ;;  %v1022_v56 = vpop.f32.mrb[11].mxu0  ;;  %vm833_vm3 = vcmp.ge.f32.partialorder %v824_v52, 0.0 }
 0x1fa   :  { %v830_v57 = vsub.f32 0.0, %v829_v55 }
 0x1fc   :  { %v831_v58 = vmul.f32 1.442695, %v830_v57 }
 0x1fe   :  { %1094 = vpow2.f32 %v831_v58 }
 0x208   :  { %v1095_v59 = vpop.eup %1094 }
 0x209   :  { %v834_v60 = vadd.f32 1.0, %v1095_v59 }
 0x20b   :  { %1096 = vrcp.f32 %v834_v60 }
 0x215   :  { %v1097_v61 = vpop.eup %1096 }
 0x216   :  { %v837_v62 = vmul.f32 %v1097_v61, %v1095_v59 }
 0x218   :  { %v838_v63 = vsel %vm833_vm3, %v1097_v61, %v837_v62 }
 0x219   :  { %840 = vst.msk [vmem:[#allocation2] sm:$0x3] %vm839_vm2, %v838_v63 }
 0x21a   :  { %1109 = shalt.err (!%p1106_p4)
}
 0x21b   :  { %s1110_s29 = scalar_lea.hbm %s1393_s5, 32 }
 0x21c   :  { %p1111_p5 = scmp.ne.s32.totalorder %s1393_s5, %s1110_s29  ;;  %p1114_p6 = scmp.lt.u32.totalorder %s1110_s29, %s1393_s5 }
 0x21e   :  { %p1116_p7 = pnand %p1114_p6, %p1111_p5 }
 0x220   :  { %1119 = shalt.err (!%p1116_p7)
}
 0x221   :  { %850 = dma.vmem_to_hbm [thread:$0]  %s848_s26, 32, %s1393_s5, [#allocation3]  }
 0x222   :  { %1120 = dma.done.wait [#allocation3], 32  }
 0x223   :  { %1121 = vsyncadd [#allocation3], 4294967264 }
 0x224   :  { %854 = vsyncpa [#allocation3], 1 }

</bundles_post_ra>
